<compile_context>
chip_gen: v7x
topology: tpu7x:2x2x1
jax: 0.10.0
libtpu: 0.0.40
codegen_flags: <defaults>
</compile_context>

<pallas_src>
import jax
import jax.numpy as jnp
import numpy as np
from jax.experimental import pallas as pl
from jax.experimental.pallas import tpu as pltpu

LANE = 128


def _round_up(x, m):
    return ((x + m - 1) // m) * m


# ----------------------------------------------------------------------------
# Fused kernel: in-kernel im2col 3x3 conv (9 tap matmuls) + bias + ReLU
# -> spatial channel-sum -> head matmul + bias.   grid = (N,), batch "parallel".
# ----------------------------------------------------------------------------
def _make_fused_kernel(H, W, Cin):
    S = H * W

    def kernel(x_ref, cw_ref, cb_ref, hw_ref, hb_ref, o_ref):
        # x_ref:  [H+2, W+2, Cin]  bf16 (spatially pre-padded for SAME conv)
        # cw_ref: [9, Cin, Cpad]   bf16 (3x3 taps, lane-padded output channels)
        # cb_ref: [1, Cpad]        f32
        # hw_ref: [Cpad, NCpad]    f32 (1/(H*W) mean already folded in)
        # hb_ref: [1, NCpad]       f32
        # o_ref:  [1, NCpad]       f32
        Cpad = cw_ref.shape[-1]
        xv = x_ref[...]                                  # whole padded image in VMEM

        # backbone: 3x3 SAME conv as 9 shifted-tap matmuls, f32 accumulate.
        acc = jnp.zeros((S, Cpad), jnp.float32)
        t = 0
        for di in range(3):
            for dj in range(3):
                tap = xv[di:di + H, dj:dj + W, :].reshape(S, Cin)   # [S, Cin] bf16
                acc = acc + jnp.dot(tap, cw_ref[t],
                                    preferred_element_type=jnp.float32)
                t += 1

        feat = jnp.maximum(acc + cb_ref[...], 0.0)       # bias + ReLU   [S, Cpad]

        # neck: raw channel sums (mean divide folded into head weights).
        pooled = jnp.sum(feat, axis=0, keepdims=True)    # [1, Cpad]

        # head: [1, Cpad] @ [Cpad, NCpad] + bias, lane-dense store.
        o_ref[...] = (
            jnp.dot(pooled, hw_ref[...], preferred_element_type=jnp.float32)
            + hb_ref[...]
        )

    return kernel


def fused_mlrfnet_call(x_pad, conv_w, conv_b, head_w, head_b, *, H, W, Cin):
    N = x_pad.shape[0]
    Cpad = conv_w.shape[-1]
    NCpad = head_w.shape[-1]
    S = H * W

    flops = N * (2 * 9 * S * Cin * Cpad + 2 * Cpad * NCpad)
    bytes_accessed = int(
        x_pad.size * x_pad.dtype.itemsize
        + conv_w.size * 2 + conv_b.size * 4
        + head_w.size * 4 + head_b.size * 4
        + N * NCpad * 4
    )

    return pl.pallas_call(
        _make_fused_kernel(H, W, Cin),
        out_shape=jax.ShapeDtypeStruct((N, 1, NCpad), jnp.float32),
        grid_spec=pltpu.PrefetchScalarGridSpec(
            num_scalar_prefetch=0,
            grid=(N,),
            in_specs=[
                pl.BlockSpec((None, H + 2, W + 2, Cin), lambda b: (b, 0, 0, 0)),  # x
                pl.BlockSpec((9, Cin, Cpad), lambda b: (0, 0, 0)),   # conv taps
                pl.BlockSpec((1, Cpad), lambda b: (0, 0)),           # conv bias
                pl.BlockSpec((Cpad, NCpad), lambda b: (0, 0)),       # head weights
                pl.BlockSpec((1, NCpad), lambda b: (0, 0)),          # head bias
            ],
            out_specs=pl.BlockSpec((None, 1, NCpad), lambda b: (b, 0, 0)),
        ),
        compiler_params=pltpu.CompilerParams(dimension_semantics=("parallel",)),
        cost_estimate=pl.CostEstimate(
            flops=flops, transcendentals=0, bytes_accessed=bytes_accessed),
    )(x_pad, conv_w, conv_b, head_w, head_b)


# ----------------------------------------------------------------------------
# Full MLRFNet forward (backbone -> neck -> head)
# ----------------------------------------------------------------------------
def mlrfnet_forward(x_nchw, params):
    # NCHW (PyTorch convention) -> NHWC so channels map onto TPU lanes.
    x = jnp.transpose(x_nchw, (0, 2, 3, 1)).astype(jnp.float32)
    N, H, W, Cin = x.shape
    Cout = params["conv_w"].shape[-1]
    NC = params["head_w"].shape[-1]
    S = H * W

    # lane-dense (128-aligned) channel / class dims; weights are static so padding is free.
    Cpad = _round_up(Cout, LANE)
    NCpad = _round_up(NC, LANE)

    # spatial SAME-conv pre-pad + bf16 cast (tiny; im2col itself happens in-kernel).
    x_pad = jnp.pad(x, ((0, 0), (1, 1), (1, 1), (0, 0))).astype(jnp.bfloat16)

    conv_w = params["conv_w"].reshape(9, Cin, Cout)                    # HWIO -> taps
    conv_w = jnp.pad(conv_w, ((0, 0), (0, 0), (0, Cpad - Cout))).astype(jnp.bfloat16)
    conv_b = jnp.pad(params["conv_b"].reshape(1, Cout).astype(jnp.float32),
                     ((0, 0), (0, Cpad - Cout)))

    # fold the 1/(H*W) global-average divide into the head weights.
    head_w = params["head_w"].astype(jnp.float32) * (1.0 / S)          # [Cout, NC]
    head_w = jnp.pad(head_w, ((0, Cpad - Cout), (0, NCpad - NC)))
    head_b = jnp.pad(params["head_b"].reshape(1, NC).astype(jnp.float32),
                     ((0, 0), (0, NCpad - NC)))

    logits_pad = fused_mlrfnet_call(
        x_pad, conv_w, conv_b, head_w, head_b, H=H, W=W, Cin=Cin)      # [N, 1, NCpad]
    return logits_pad.reshape(N, NCpad)[:, :NC]                        # [N, num_classes]


if __name__ == "__main__":
    key = jax.random.PRNGKey(0)
    k_x, k_cw, k_cb, k_hw, k_hb = jax.random.split(key, 5)

    N, Cin, H, W = 2, 4, 16, 16
    Cout, num_classes = 16, 10

    x = jax.random.normal(k_x, (N, Cin, H, W), dtype=jnp.float32)

    params = {
        "conv_w": 0.1 * jax.random.normal(k_cw, (3, 3, Cin, Cout), jnp.float32),  # HWIO
        "conv_b": 0.1 * jax.random.normal(k_cb, (1, Cout), jnp.float32),
        "head_w": 0.1 * jax.random.normal(k_hw, (Cout, num_classes), jnp.float32),
        "head_b": 0.1 * jax.random.normal(k_hb, (1, num_classes), jnp.float32),
    }

    logits = jax.jit(mlrfnet_forward)(x, params)
    logits = jax.block_until_ready(logits)

    # Pure-JAX reference (same math as the PyTorch Sequential forward).
    x_nhwc = jnp.transpose(x, (0, 2, 3, 1))
    ref = jax.lax.conv_general_dilated(
        x_nhwc, params["conv_w"], (1, 1), "SAME",
        dimension_numbers=("NHWC", "HWIO", "NHWC"))
    ref = jnp.maximum(ref + params["conv_b"].reshape(1, 1, 1, Cout), 0.0)
    pooled = ref.mean(axis=(1, 2))
    logits_ref = pooled @ params["head_w"] + params["head_b"]

    assert logits.shape == (N, num_classes)
    np.testing.assert_allclose(np.asarray(logits), np.asarray(logits_ref),
                               rtol=5e-2, atol=5e-2)
    print("KERNEL_OK")
</pallas_src>

<mosaic_0001>
module attributes {stable_mosaic.version = 11 : i64} {
  func.func @kernel(%arg0: i32, %arg1: memref<1x18x18x4xbf16, #tpu.memory_space<vmem>>, %arg2: memref<9x4x128xbf16, #tpu.memory_space<vmem>>, %arg3: memref<1x128xf32, #tpu.memory_space<vmem>>, %arg4: memref<128x128xf32, #tpu.memory_space<vmem>>, %arg5: memref<1x128xf32, #tpu.memory_space<vmem>>, %arg6: memref<1x1x128xf32, #tpu.memory_space<vmem>>) attributes {dimension_semantics = [#tpu.dimension_semantics<parallel>], iteration_bounds = array<i64: 2>, scalar_prefetch = 0 : i64, scratch_operands = 0 : i64, tpu.core_type = #tpu.core_type<tc>, window_params = [{transform_indices = @transform_0, window_bounds = array<i64: 1, 18, 18, 4>}, {pipeline_mode = #tpu.pipeline_mode<synchronous>, transform_indices = @transform_1, window_bounds = array<i64: 9, 4, 128>}, {pipeline_mode = #tpu.pipeline_mode<synchronous>, transform_indices = @transform_2, window_bounds = array<i64: 1, 128>}, {pipeline_mode = #tpu.pipeline_mode<synchronous>, transform_indices = @transform_3, window_bounds = array<i64: 128, 128>}, {pipeline_mode = #tpu.pipeline_mode<synchronous>, transform_indices = @transform_4, window_bounds = array<i64: 1, 128>}, {transform_indices = @transform_5, window_bounds = array<i64: 1, 1, 128>}]} {
    %c0 = arith.constant 0 : index
    %c0_0 = arith.constant 0 : index
    %c0_1 = arith.constant 0 : index
    %c0_2 = arith.constant 0 : index
    %0 = vector.load %arg1[%c0, %c0_0, %c0_1, %c0_2] : memref<1x18x18x4xbf16, #tpu.memory_space<vmem>>, vector<1x18x18x4xbf16>
    %1 = vector.shape_cast %0 : vector<1x18x18x4xbf16> to vector<18x18x4xbf16>
    %cst = arith.constant 0.000000e+00 : f32
    %2 = vector.broadcast %cst : f32 to vector<256x128xf32>
    %3 = vector.extract_strided_slice %1 {offsets = [0, 0, 0], sizes = [16, 16, 4], strides = [1, 1, 1]} : vector<18x18x4xbf16> to vector<16x16x4xbf16>
    %4 = vector.shape_cast %3 : vector<16x16x4xbf16> to vector<256x4xbf16>
    %c0_3 = arith.constant 0 : index
    %c0_4 = arith.constant 0 : index
    %c0_5 = arith.constant 0 : index
    %5 = vector.load %arg2[%c0_3, %c0_4, %c0_5] : memref<9x4x128xbf16, #tpu.memory_space<vmem>>, vector<1x4x128xbf16>
    %6 = vector.shape_cast %5 : vector<1x4x128xbf16> to vector<4x128xbf16>
    %cst_6 = arith.constant dense<0.000000e+00> : vector<256x128xf32>
    %7 = tpu.matmul %4, %6, %cst_6 {dimension_numbers = #tpu.dot_dimension_numbers<[1], [0], [0], [1], [0, 0, 1, 1], [], []>} : vector<256x4xbf16>, vector<4x128xbf16>, vector<256x128xf32> -> vector<256x128xf32>
    %8 = arith.addf %2, %7 : vector<256x128xf32>
    %9 = vector.extract_strided_slice %1 {offsets = [0, 1, 0], sizes = [16, 16, 4], strides = [1, 1, 1]} : vector<18x18x4xbf16> to vector<16x16x4xbf16>
    %10 = vector.shape_cast %9 : vector<16x16x4xbf16> to vector<256x4xbf16>
    %c1 = arith.constant 1 : index
    %c0_7 = arith.constant 0 : index
    %c0_8 = arith.constant 0 : index
    %11 = vector.load %arg2[%c1, %c0_7, %c0_8] : memref<9x4x128xbf16, #tpu.memory_space<vmem>>, vector<1x4x128xbf16>
    %12 = vector.shape_cast %11 : vector<1x4x128xbf16> to vector<4x128xbf16>
    %cst_9 = arith.constant dense<0.000000e+00> : vector<256x128xf32>
    %13 = tpu.matmul %10, %12, %cst_9 {dimension_numbers = #tpu.dot_dimension_numbers<[1], [0], [0], [1], [0, 0, 1, 1], [], []>} : vector<256x4xbf16>, vector<4x128xbf16>, vector<256x128xf32> -> vector<256x128xf32>
    %14 = arith.addf %8, %13 : vector<256x128xf32>
    %15 = vector.extract_strided_slice %1 {offsets = [0, 2, 0], sizes = [16, 16, 4], strides = [1, 1, 1]} : vector<18x18x4xbf16> to vector<16x16x4xbf16>
    %16 = vector.shape_cast %15 : vector<16x16x4xbf16> to vector<256x4xbf16>
    %c2 = arith.constant 2 : index
    %c0_10 = arith.constant 0 : index
    %c0_11 = arith.constant 0 : index
    %17 = vector.load %arg2[%c2, %c0_10, %c0_11] : memref<9x4x128xbf16, #tpu.memory_space<vmem>>, vector<1x4x128xbf16>
    %18 = vector.shape_cast %17 : vector<1x4x128xbf16> to vector<4x128xbf16>
    %cst_12 = arith.constant dense<0.000000e+00> : vector<256x128xf32>
    %19 = tpu.matmul %16, %18, %cst_12 {dimension_numbers = #tpu.dot_dimension_numbers<[1], [0], [0], [1], [0, 0, 1, 1], [], []>} : vector<256x4xbf16>, vector<4x128xbf16>, vector<256x128xf32> -> vector<256x128xf32>
    %20 = arith.addf %14, %19 : vector<256x128xf32>
    %21 = vector.extract_strided_slice %1 {offsets = [1, 0, 0], sizes = [16, 16, 4], strides = [1, 1, 1]} : vector<18x18x4xbf16> to vector<16x16x4xbf16>
    %22 = vector.shape_cast %21 : vector<16x16x4xbf16> to vector<256x4xbf16>
    %c3 = arith.constant 3 : index
    %c0_13 = arith.constant 0 : index
    %c0_14 = arith.constant 0 : index
    %23 = vector.load %arg2[%c3, %c0_13, %c0_14] : memref<9x4x128xbf16, #tpu.memory_space<vmem>>, vector<1x4x128xbf16>
    %24 = vector.shape_cast %23 : vector<1x4x128xbf16> to vector<4x128xbf16>
    %cst_15 = arith.constant dense<0.000000e+00> : vector<256x128xf32>
    %25 = tpu.matmul %22, %24, %cst_15 {dimension_numbers = #tpu.dot_dimension_numbers<[1], [0], [0], [1], [0, 0, 1, 1], [], []>} : vector<256x4xbf16>, vector<4x128xbf16>, vector<256x128xf32> -> vector<256x128xf32>
    %26 = arith.addf %20, %25 : vector<256x128xf32>
    %27 = vector.extract_strided_slice %1 {offsets = [1, 1, 0], sizes = [16, 16, 4], strides = [1, 1, 1]} : vector<18x18x4xbf16> to vector<16x16x4xbf16>
    %28 = vector.shape_cast %27 : vector<16x16x4xbf16> to vector<256x4xbf16>
    %c4 = arith.constant 4 : index
    %c0_16 = arith.constant 0 : index
    %c0_17 = arith.constant 0 : index
    %29 = vector.load %arg2[%c4, %c0_16, %c0_17] : memref<9x4x128xbf16, #tpu.memory_space<vmem>>, vector<1x4x128xbf16>
    %30 = vector.shape_cast %29 : vector<1x4x128xbf16> to vector<4x128xbf16>
    %cst_18 = arith.constant dense<0.000000e+00> : vector<256x128xf32>
    %31 = tpu.matmul %28, %30, %cst_18 {dimension_numbers = #tpu.dot_dimension_numbers<[1], [0], [0], [1], [0, 0, 1, 1], [], []>} : vector<256x4xbf16>, vector<4x128xbf16>, vector<256x128xf32> -> vector<256x128xf32>
    %32 = arith.addf %26, %31 : vector<256x128xf32>
    %33 = vector.extract_strided_slice %1 {offsets = [1, 2, 0], sizes = [16, 16, 4], strides = [1, 1, 1]} : vector<18x18x4xbf16> to vector<16x16x4xbf16>
    %34 = vector.shape_cast %33 : vector<16x16x4xbf16> to vector<256x4xbf16>
    %c5 = arith.constant 5 : index
    %c0_19 = arith.constant 0 : index
    %c0_20 = arith.constant 0 : index
    %35 = vector.load %arg2[%c5, %c0_19, %c0_20] : memref<9x4x128xbf16, #tpu.memory_space<vmem>>, vector<1x4x128xbf16>
    %36 = vector.shape_cast %35 : vector<1x4x128xbf16> to vector<4x128xbf16>
    %cst_21 = arith.constant dense<0.000000e+00> : vector<256x128xf32>
    %37 = tpu.matmul %34, %36, %cst_21 {dimension_numbers = #tpu.dot_dimension_numbers<[1], [0], [0], [1], [0, 0, 1, 1], [], []>} : vector<256x4xbf16>, vector<4x128xbf16>, vector<256x128xf32> -> vector<256x128xf32>
    %38 = arith.addf %32, %37 : vector<256x128xf32>
    %39 = vector.extract_strided_slice %1 {offsets = [2, 0, 0], sizes = [16, 16, 4], strides = [1, 1, 1]} : vector<18x18x4xbf16> to vector<16x16x4xbf16>
    %40 = vector.shape_cast %39 : vector<16x16x4xbf16> to vector<256x4xbf16>
    %c6 = arith.constant 6 : index
    %c0_22 = arith.constant 0 : index
    %c0_23 = arith.constant 0 : index
    %41 = vector.load %arg2[%c6, %c0_22, %c0_23] : memref<9x4x128xbf16, #tpu.memory_space<vmem>>, vector<1x4x128xbf16>
    %42 = vector.shape_cast %41 : vector<1x4x128xbf16> to vector<4x128xbf16>
    %cst_24 = arith.constant dense<0.000000e+00> : vector<256x128xf32>
    %43 = tpu.matmul %40, %42, %cst_24 {dimension_numbers = #tpu.dot_dimension_numbers<[1], [0], [0], [1], [0, 0, 1, 1], [], []>} : vector<256x4xbf16>, vector<4x128xbf16>, vector<256x128xf32> -> vector<256x128xf32>
    %44 = arith.addf %38, %43 : vector<256x128xf32>
    %45 = vector.extract_strided_slice %1 {offsets = [2, 1, 0], sizes = [16, 16, 4], strides = [1, 1, 1]} : vector<18x18x4xbf16> to vector<16x16x4xbf16>
    %46 = vector.shape_cast %45 : vector<16x16x4xbf16> to vector<256x4xbf16>
    %c7 = arith.constant 7 : index
    %c0_25 = arith.constant 0 : index
    %c0_26 = arith.constant 0 : index
    %47 = vector.load %arg2[%c7, %c0_25, %c0_26] : memref<9x4x128xbf16, #tpu.memory_space<vmem>>, vector<1x4x128xbf16>
    %48 = vector.shape_cast %47 : vector<1x4x128xbf16> to vector<4x128xbf16>
    %cst_27 = arith.constant dense<0.000000e+00> : vector<256x128xf32>
    %49 = tpu.matmul %46, %48, %cst_27 {dimension_numbers = #tpu.dot_dimension_numbers<[1], [0], [0], [1], [0, 0, 1, 1], [], []>} : vector<256x4xbf16>, vector<4x128xbf16>, vector<256x128xf32> -> vector<256x128xf32>
    %50 = arith.addf %44, %49 : vector<256x128xf32>
    %51 = vector.extract_strided_slice %1 {offsets = [2, 2, 0], sizes = [16, 16, 4], strides = [1, 1, 1]} : vector<18x18x4xbf16> to vector<16x16x4xbf16>
    %52 = vector.shape_cast %51 : vector<16x16x4xbf16> to vector<256x4xbf16>
    %c8 = arith.constant 8 : index
    %c0_28 = arith.constant 0 : index
    %c0_29 = arith.constant 0 : index
    %53 = vector.load %arg2[%c8, %c0_28, %c0_29] : memref<9x4x128xbf16, #tpu.memory_space<vmem>>, vector<1x4x128xbf16>
    %54 = vector.shape_cast %53 : vector<1x4x128xbf16> to vector<4x128xbf16>
    %cst_30 = arith.constant dense<0.000000e+00> : vector<256x128xf32>
    %55 = tpu.matmul %52, %54, %cst_30 {dimension_numbers = #tpu.dot_dimension_numbers<[1], [0], [0], [1], [0, 0, 1, 1], [], []>} : vector<256x4xbf16>, vector<4x128xbf16>, vector<256x128xf32> -> vector<256x128xf32>
    %56 = arith.addf %50, %55 : vector<256x128xf32>
    %c0_31 = arith.constant 0 : index
    %c0_32 = arith.constant 0 : index
    %57 = vector.load %arg3[%c0_31, %c0_32] : memref<1x128xf32, #tpu.memory_space<vmem>>, vector<1x128xf32>
    %58 = vector.broadcast %57 : vector<1x128xf32> to vector<256x128xf32>
    %59 = arith.addf %56, %58 : vector<256x128xf32>
    %cst_33 = arith.constant 0.000000e+00 : f32
    %60 = vector.broadcast %cst_33 : f32 to vector<256x128xf32>
    %61 = arith.maximumf %59, %60 : vector<256x128xf32>
    %cst_34 = arith.constant dense<0.000000e+00> : vector<128xf32>
    %62 = vector.multi_reduction <add>, %61, %cst_34 [0] : vector<256x128xf32> to vector<128xf32>
    %63 = vector.shape_cast %62 : vector<128xf32> to vector<1x128xf32>
    %c0_35 = arith.constant 0 : index
    %c0_36 = arith.constant 0 : index
    %64 = vector.load %arg4[%c0_35, %c0_36] : memref<128x128xf32, #tpu.memory_space<vmem>>, vector<128x128xf32>
    %cst_37 = arith.constant dense<0.000000e+00> : vector<1x128xf32>
    %65 = tpu.matmul %63, %64, %cst_37 {dimension_numbers = #tpu.dot_dimension_numbers<[1], [0], [0], [1], [0, 0, 1, 1], [], []>} : vector<1x128xf32>, vector<128x128xf32>, vector<1x128xf32> -> vector<1x128xf32>
    %c0_38 = arith.constant 0 : index
    %c0_39 = arith.constant 0 : index
    %66 = vector.load %arg5[%c0_38, %c0_39] : memref<1x128xf32, #tpu.memory_space<vmem>>, vector<1x128xf32>
    %67 = arith.addf %65, %66 : vector<1x128xf32>
    %c0_40 = arith.constant 0 : index
    %c0_41 = arith.constant 0 : index
    %c0_42 = arith.constant 0 : index
    %68 = vector.load %arg6[%c0_40, %c0_41, %c0_42] : memref<1x1x128xf32, #tpu.memory_space<vmem>>, vector<1x1x128xf32>
    %69 = vector.shape_cast %68 : vector<1x1x128xf32> to vector<1x128xf32>
    %70 = vector.shape_cast %67 : vector<1x128xf32> to vector<1x1x128xf32>
    tpu.vector_store %arg6[%c0_40, %c0_41, %c0_42], %70 {strides = array<i32>} : memref<1x1x128xf32, #tpu.memory_space<vmem>>, vector<1x1x128xf32>,
    return
  }
  func.func @transform_0(%arg0: i32) -> (i32, i32, i32, i32) {
    %c0_i32 = arith.constant 0 : i32
    %c0_i32_0 = arith.constant 0 : i32
    %c0_i32_1 = arith.constant 0 : i32
    %c0_i32_2 = arith.constant 0 : i32
    return %arg0, %c0_i32, %c0_i32_0, %c0_i32_1 : i32, i32, i32, i32
  }
  func.func @transform_1(%arg0: i32) -> (i32, i32, i32) {
    %c0_i32 = arith.constant 0 : i32
    %c0_i32_0 = arith.constant 0 : i32
    %c0_i32_1 = arith.constant 0 : i32
    %c0_i32_2 = arith.constant 0 : i32
    return %c0_i32, %c0_i32_0, %c0_i32_1 : i32, i32, i32
  }
  func.func @transform_2(%arg0: i32) -> (i32, i32) {
    %c0_i32 = arith.constant 0 : i32
    %c0_i32_0 = arith.constant 0 : i32
    %c0_i32_1 = arith.constant 0 : i32
    return %c0_i32, %c0_i32_0 : i32, i32
  }
  func.func @transform_3(%arg0: i32) -> (i32, i32) {
    %c0_i32 = arith.constant 0 : i32
    %c0_i32_0 = arith.constant 0 : i32
    %c0_i32_1 = arith.constant 0 : i32
    return %c0_i32, %c0_i32_0 : i32, i32
  }
  func.func @transform_4(%arg0: i32) -> (i32, i32) {
    %c0_i32 = arith.constant 0 : i32
    %c0_i32_0 = arith.constant 0 : i32
    %c0_i32_1 = arith.constant 0 : i32
    return %c0_i32, %c0_i32_0 : i32, i32
  }
  func.func @transform_5(%arg0: i32) -> (i32, i32, i32) {
    %c0_i32 = arith.constant 0 : i32
    %c0_i32_0 = arith.constant 0 : i32
    %c0_i32_1 = arith.constant 0 : i32
    return %arg0, %c0_i32, %c0_i32_0 : i32, i32, i32
  }
}

</mosaic_0001>

<bundles_post_ra>
// kernel: mlrfnet_forward.1
= control target key start
LH: loop header
LB: loop body
LE: loop exit
PB: predicated region body
PF: predicated region fallthrough
CT: control target
= control target key end

     0   :  { %10 = vsyncpa [#allocation3], 0  ;;  %s5584_s0 = inlined_call_operand.vmem [shape: bf16[2,18,18,4], index: 0, kind: input, shape index: {}]   ;;  %s5585_s1 = inlined_call_operand.vmem [shape: bf16[9,4,128], index: 1, kind: input, shape index: {}]   ;;  %s5586_s2 = inlined_call_operand.vmem [shape: f32[1,128], index: 2, kind: input, shape index: {}]   ;;  %s5587_s3 = inlined_call_operand.vmem [shape: f32[128,128], index: 3, kind: input, shape index: {}]   ;;  %s5588_s4 = inlined_call_operand.vmem [shape: f32[1,128], index: 4, kind: input, shape index: {}]   ;;  %s5589_s5 = inlined_call_operand.hbm [shape: f32[2,1,128], index: 5, kind: output, shape index: {}]  }
   0x1   :  { %12 = vsyncpa [#allocation3 + $0x1], 0  ;;  %s4404_s18 = smov 0   ;;  %s4406_s19 = smov 0  }
   0x2   :  { %s4408_s20 = smov 0   ;;  %s4410_s21 = smov 0  }
   0x3 LB: > { %s4425_s22 = sadd.s32 4294967295, %s4368_s21   ;;  %s3202_s23 = sadd.s32 4294967294, %s4368_s21   ;;  %s4368_s21 = sphi %s4410_s21, %s5681_s21   ;;  %s4364_s20 = sphi %s4408_s20, %s5680_s20   ;;  %s4360_s19 = sphi %s4406_s19, %s5679_s19   ;;  %s4356_s18 = sphi %s4404_s18, %s5678_s18  }
   0x4   : > { %s4429_s24 = sadd.s32 1, %s4368_s21   ;;  %s135_s25 = sadd.s32 1, %s4364_s20 }
   0x5   : > { %s132_s26 = ssub.s32 %s4368_s21, %s4429_s24  ;;  %p145_p0 = scmp.ne.s32.totalorder %s4364_s20, %s4360_s19 }
   0x6   : > { %p133_p1 = scmp.eq.s32.totalorder %s132_s26, 0  ;;  %p146_p2 = scmp.eq.s32.totalorder %s4425_s22, 1 }
   0x7   : > { %p151_p3 = scmp.ne.s32.totalorder %s4360_s19, %s4356_s18  ;;  %p152_p4 = scmp.eq.s32.totalorder %s3202_s23, 1 }
   0x8   : > { %s4440_s27 = scalar_select %p133_p1, %s4364_s20, %s135_s25  }
   0x9   : > { %p4442_p5 = por %p146_p2, %p145_p0  ;;  %p4446_p6 = por %p152_p4, %p151_p3 }
   0xa   : > { %p3205_p7 = scmp.ge.s32.totalorder %s4368_s21, 1  ;;  %p190_p8 = scmp.lt.s32.totalorder %s4368_s21, 3 }
   0xc   : > { %p191_p9 = pnand %p3205_p7, %p190_p8 }
   0xe   : > { %194 = sbr.rel (%p191_p9) target bundleno = 822 (0x336), region = 40 }
  0x15   : > { %v3207_v0 = vld [vmem:[%s5585_s1 + $0x2] sm:$0x3]  ;;  %vm764_vm0 = vcmask 1041408   ;;  %p217_p10 = scmp.lt.s32.totalorder %s4425_s22, 1  ;;  %v3339_v2 = vld [vmem:[%s5585_s1 + $0x8] sm:$0x3] }
  0x16   : > { %4230 = vmatprep.subr.msk.bf16.mxu0 %vm764_vm0, %v3207_v0  ;;  %4231 = vmatprep.subr.msk.bf16.mxu1 %vm764_vm0, %v3207_v0  ;;  %v766_v1 = vsel %vm764_vm0, %v3207_v0, 0  ;;  %v277_v3 = vld [vmem:[%s5585_s1] sm:$0x3]  ;;  %vm278_vm1 = vsmask.f32 3328  ;;  %v4474_v4 = vsel %vm764_vm0, %v3339_v2, 0 }
  0x17   : > { %3606 = vmatpush3.bf16.msra.mxu0 %v766_v1  ;;  %3971 = vmatpush3.bf16.msra.mxu1 %v766_v1  ;;  %s218_s9 = scalar_select %p217_p10, %s4425_s22, 1  ;;  %vm279_vm2 = vsmask.f32 7440  ;;  %5628 = vst [vmem:[#allocation5_spill] sm:$0xff] %v4474_v4  ;;  %v4477_v5 = vsel %vm764_vm0, %v277_v3, 0  ;;  %vm715_vm3 = vcmask 31744  }
  0x18   : > { %4235 = vmatprep.subr.msk.bf16.mxu0 %vm764_vm0, %v3339_v2  ;;  %4232 = vmatprep.subr.msk.bf16.mxu1 %vm764_vm0, %v277_v3  ;;  %v4482_v6 = vld [vmem:[%s5585_s1 + $0xa] sm:$0x3]  ;;  %vm4521_vm4 = vmor %vm278_vm1, %vm279_vm2  ;;  %vm1237_vm5 = vcmask 1042432   ;;  %vm1238_vm6 = vcmask 1046532   ;;  %vm4371_vm8 = vmmov 0   ;;  %s215_s16 = sand.u32 1, %s4360_s19  }
  0x19   : > { %s4241_s12 = smul.u32 216, %s218_s9  ;;  %v4506_v18 = vsel %vm764_vm0, %v4482_v6, 0  ;;  %vm4850_vm7 = vmor %vm1237_vm5, %vm1238_vm6  ;;  %s3432_s25 = sshll.u32 %s4425_s22, 4 }
  0x1a   : > { %s216_s26 = scalar_lea.vmem [#allocation2], %s215_s16  ;;  %s5542_s8 = scalar_lea.hbm %s5589_s5, %s3432_s25 }
  0x1b   : > { %s4471_s15 = scalar_lea.vmem %s5584_s0, %s4241_s12  ;;  %s3147_s30 = sshll.u32 %s216_s26, 4  ;;  %s5544_s30 = int_to_ptr.vmem [resolvable:$true] %s3147_s30 }
  0x1c   : > { %v4485_v7 = vld [vmem:[%s4471_s15] sm:$0xf]  ;;  %v4488_v8 = vld [vmem:[%s4471_s15 + $0x4] sm:$0xf]  ;;  %v225_v9 = vld [vmem:[%s4471_s15 + $0x8] sm:$0x1] }
  0x1d   : > { %v282_v10 = vshrl.u32 %v4485_v7, 16  ;;  %v285_v11 = vshll.u32 %v4485_v7, 16  ;;  %v291_v12 = vshll.u32 %v4488_v8, 16  ;;  %v295_v13 = vshrl.u32 %v4488_v8, 16  ;;  %v4496_v14 = vld [vmem:[%s4471_s15 + $0x48] sm:$0xf] }
  0x1e   : > { %v301_v15 = vshll.u32 %v225_v9, 16  ;;  %v4499_v16 = vld [vmem:[%s4471_s15 + $0x4c] sm:$0xf]  ;;  %v4502_v17 = vld [vmem:[%s4471_s15 + $0x50] sm:$0x1]  ;;  %v426_v24 = vshrl.u32 %v4496_v14, 16 }
  0x1f   : > { %v284_v19 = vrot.slane %v282_v10, 4  ;;  %v287_v20 = vrot.slane %v285_v11, 5  ;;  %v293_v21 = vrot.slane %v291_v12, 5  ;;  %v297_v22 = vrot.slane %v295_v13, 4  ;;  %v4514_v31 = vld [vmem:[%s4471_s15 + $0xc] sm:$0xf] }
  0x20   : > { %v303_v23 = vrot.slane %v301_v15, 5  ;;  %v429_v25 = vshll.u32 %v4496_v14, 16  ;;  %v435_v26 = vshll.u32 %v4499_v16, 16  ;;  %v439_v29 = vshrl.u32 %v4499_v16, 16  ;;  %v4517_v32 = vld [vmem:[%s4471_s15 + $0x10] sm:$0xf] }
  0x21   : > { %v288_v27 = vor.u32 %v287_v20, %v284_v19  ;;  %v298_v28 = vor.u32 %v297_v22, %v293_v21  ;;  %v445_v30 = vshll.u32 %v4502_v17, 16  ;;  %v428_v34 = vrot.slane %v426_v24, 4  ;;  %v4528_v43 = vld [vmem:[%s4471_s15 + $0x14] sm:$0x1]  ;;  %v4542_v56 = vld [vmem:[%s4471_s15 + $0x58] sm:$0xf] }
  0x22   : > { %v431_v35 = vrot.slane %v429_v25, 5  ;;  %v437_v36 = vrot.slane %v435_v26, 5  ;;  %v441_v40 = vrot.slane %v439_v29, 4  ;;  %v306_v44 = vshrl.u32 %v4514_v31, 16  ;;  %v4539_v51 = vld [vmem:[%s4471_s15 + $0x54] sm:$0xf] }
  0x23   : > { %v289_v38 = vrot.slane %v288_v27, 4  ;;  %v299_v39 = vrot.slane %v298_v28, 4  ;;  %v447_v41 = vrot.slane %v445_v30, 5  ;;  %v309_v45 = vshll.u32 %v4514_v31, 16  ;;  %v4549_v63 = vld [vmem:[%s4471_s15 + $0x5c] sm:$0x1] }
  0x24   : > { %v432_v42 = vor.u32 %v431_v35, %v428_v34  ;;  %v315_v46 = vshll.u32 %v4517_v32, 16  ;;  %v442_v49 = vor.u32 %v441_v40, %v437_v36  ;;  %v319_v50 = vshrl.u32 %v4517_v32, 16  ;;  %v4557_v11 = vld [vmem:[%s4471_s15 + $0x18] sm:$0xf]  ;;  %v4562_v20 = vld [vmem:[%s4471_s15 + $0x1c] sm:$0xf] }
  0x25   : > { %v294_v47 = vsel %vm4521_vm4, %v289_v38, %v293_v21  ;;  %v304_v48 = vsel %vm4521_vm4, %v299_v39, %v303_v23  ;;  %v308_v54 = vrot.slane %v306_v44, 4  ;;  %v311_v55 = vrot.slane %v309_v45, 5  ;;  %v4571_v27 = vld [vmem:[%s4471_s15 + $0x20] sm:$0x1]  ;;  %s3135_s9 = scalar_lea.sflag [#allocation3], %s215_s16  ;;  %s4306_s10 = scalar_lea.vmem %s5544_s30, 16 }
  0x26   : > { %v3208_v52 = vcombine.low %v294_v47, %v304_v48  ;;  %v433_v53 = vrot.slane %v432_v42, 4  ;;  %v443_v57 = vrot.slane %v442_v49, 4  ;;  %v317_v58 = vrot.slane %v315_v46, 5  ;;  %v4579_v38 = vld [vmem:[%s4471_s15 + $0x60] sm:$0xf]  ;;  %p4307_p11 = scmp.ne.s32.totalorder %s5544_s30, %s4306_s10  ;;  %s4373_s22 = smov [#allocation2]  }
  0x27   : > { %v321_v59 = vrot.slane %v319_v50, 4  ;;  %v325_v60 = vshll.u32 %v4528_v43, 16  ;;  %v312_v62 = vor.u32 %v311_v55, %v308_v54  ;;  %v450_v0 = vshrl.u32 %v4539_v51, 16  ;;  %v4586_v48 = vld [vmem:[%s4471_s15 + $0x64] sm:$0xf]  ;;  %s4310_s11 = sshll.u32 %s4373_s22, 4  ;;  %s4311_s11 = int_to_ptr.vmem [resolvable:$false] %s4310_s11 }
  0x28   : > { %3607 = vmatprep.mubr.msk.bf16.mxu0 %vm715_vm3, %v3208_v52  ;;  %v438_v61 = vsel %vm4521_vm4, %v433_v53, %v437_v36  ;;  %v453_v1 = vshll.u32 %v4539_v51, 16  ;;  %v448_v2 = vsel %vm4521_vm4, %v443_v57, %v447_v41  ;;  %v459_v10 = vshll.u32 %v4542_v56, 16  ;;  %v4594_v53 = vld [vmem:[%s4471_s15 + $0x68] sm:$0x1]  ;;  %p4308_p12 = pnand %p4307_p11, %p4442_p5  ;;  %s4312_s12 = scalar_lea.vmem %s4311_s11, 32 }
  0x29   : > { %v322_v3 = vor.u32 %v321_v59, %v317_v58  ;;  %v327_v9 = vrot.slane %v325_v60, 5  ;;  %v4559_v12 = vcombine.low %v438_v61, %v448_v2  ;;  %v313_v13 = vrot.slane %v312_v62, 4  ;;  %p4313_p0 = scmp.lt.s32.totalorder %s5544_s30, %s4311_s11  ;;  %p4314_p1 = scmp.lt.s32.totalorder %s4312_s12, %s4306_s10 }
  0x2a   : > { %v452_v15 = vrot.slane %v450_v0, 4  ;;  %v455_v19 = vrot.slane %v453_v1, 5  ;;  %v461_v22 = vrot.slane %v459_v10, 5  ;;  %v463_v23 = vshrl.u32 %v4542_v56, 16  ;;  %v4602_v1 = vld [vmem:[%s4471_s15 + $0x24] sm:$0xf]  ;;  %p4309_p13 = pneg %p4308_p12 }
  0x2b   : > { %5631 = vst [vmem:[#allocation6_spill] sm:$0xff] %v4559_v12  ;;  %v323_v21 = vrot.slane %v322_v3, 4  ;;  %v469_v24 = vshll.u32 %v4549_v63, 16  ;;  %3619 = vmatprep.mubr.msk.bf16.mxu1 %vm715_vm3, %v4559_v12  ;;  %v318_v25 = vsel %vm4521_vm4, %v313_v13, %v317_v58  ;;  %v330_v28 = vshrl.u32 %v4557_v11, 16  ;;  %v4610_v13 = vld [vmem:[%s4471_s15 + $0x28] sm:$0xf]  ;;  %p4315_p2 = por %p4314_p1, %p4313_p0 }
  0x2c   : > { %v456_v26 = vor.u32 %v455_v19, %v452_v15  ;;  %v333_v29 = vshll.u32 %v4557_v11, 16  ;;  %v465_v34 = vrot.slane %v463_v23, 4  ;;  %v339_v36 = vshll.u32 %v4562_v20, 16  ;;  %v4617_v23 = vld [vmem:[%s4471_s15 + $0x2c] sm:$0x1] }
  0x2d   : > { %v328_v30 = vsel %vm4521_vm4, %v323_v21, %v327_v9  ;;  %v471_v35 = vrot.slane %v469_v24, 5  ;;  %v332_v41 = vrot.slane %v330_v28, 4  ;;  %v343_v46 = vshrl.u32 %v4562_v20, 16  ;;  %v4623_v28 = vld [vmem:[%s5585_s1 + $0x4] sm:$0x3]  ;;  %p4316_p3 = pnand %p4315_p2, %p4309_p13 }
  0x2e   : > { %v4581_v39 = vcombine.low %v318_v25, %v328_v30  ;;  %v457_v40 = vrot.slane %v456_v26, 4  ;;  %v335_v42 = vrot.slane %v333_v29, 5  ;;  %v466_v44 = vor.u32 %v465_v34, %v461_v22 }
  0x2f   : > { %v341_v45 = vrot.slane %v339_v36, 5  ;;  %v349_v47 = vshll.u32 %v4571_v27, 16  ;;  %v474_v54 = vshrl.u32 %v4579_v38, 16  ;;  %v345_v57 = vrot.slane %v343_v46, 4  ;;  %v4631_v36 = vld [vmem:[%s4471_s15 + $0x6c] sm:$0xf] }
  0x30   : > { %3608 = vmatmul.mubr.msk.bf16.vlgmr.msra.gmra.mrb[0].mxu0 %vm715_vm3, %v4581_v39  ;;  %v462_v49 = vsel %vm4521_vm4, %v457_v40, %v461_v22  ;;  %v336_v50 = vor.u32 %v335_v42, %v332_v41  ;;  %v467_v55 = vrot.slane %v466_v44, 4  ;;  %v477_v59 = vshll.u32 %v4579_v38, 16 }
  0x31   : > { %3742 = vmatpush3.bf16.msra.mxu0 %v4474_v4  ;;  %v351_v58 = vrot.slane %v349_v47, 5  ;;  %v476_v61 = vrot.slane %v474_v54, 4  ;;  %v483_v62 = vshll.u32 %v4586_v48, 16  ;;  %v487_v0 = vshrl.u32 %v4586_v48, 16  ;;  %v4757_v4 = vld [vmem:[%s4471_s15 + $0x98] sm:$0x1] }
  0x32   : > { %v337_v60 = vrot.slane %v336_v50, 4  ;;  %4237 = vmatprep.subr.msk.bf16.mxu0 %vm764_vm0, %v4482_v6  ;;  %v472_v2 = vsel %vm4521_vm4, %v467_v55, %v471_v35  ;;  %v346_v3 = vor.u32 %v345_v57, %v341_v45  ;;  %v479_v9 = vrot.slane %v477_v59, 5  ;;  %v4647_v57 = vld [vmem:[%s4471_s15 + $0x74] sm:$0x1]  ;;  %5641 = vst [vmem:[#allocation16_spill] sm:$0xff] %v4757_v4 }
  0x33   : > { %v493_v10 = vshll.u32 %v4594_v53, 16  ;;  %v4612_v15 = vcombine.low %v462_v49, %v472_v2  ;;  %v485_v21 = vrot.slane %v483_v62, 5  ;;  %v489_v22 = vrot.slane %v487_v0, 4  ;;  %v4657_v0 = vld [vmem:[%s4471_s15 + $0x30] sm:$0xf] }
  0x34   : > { %v342_v19 = vsel %vm4521_vm4, %v337_v60, %v341_v45  ;;  %v347_v6 = vrot.slane %v346_v3, 4  ;;  %v480_v24 = vor.u32 %v479_v9, %v476_v61  ;;  %v354_v26 = vshrl.u32 %v4602_v1, 16  ;;  %v4638_v45 = vld [vmem:[%s4471_s15 + $0x70] sm:$0xf] }
  0x35   : > { %5632 = vst [vmem:[#allocation7_spill] sm:$0xff] %v4612_v15  ;;  %v495_v25 = vrot.slane %v493_v10, 5  ;;  %3620 = vmatmul.mubr.msk.bf16.vlgmr.msra.gmra.mrb[0].mxu1 %vm715_vm3, %v4612_v15  ;;  %v490_v29 = vor.u32 %v489_v22, %v485_v21  ;;  %v357_v30 = vshll.u32 %v4602_v1, 16  ;;  %v363_v34 = vshll.u32 %v4610_v13, 16  ;;  %v4735_v15 = vld [vmem:[%s4471_s15 + $0x8c] sm:$0x1] }
  0x36   : > { %v367_v35 = vshrl.u32 %v4610_v13, 16  ;;  %3640 = vmatpush3.bf16.msra.mxu1 %v4477_v5  ;;  %v352_v40 = vsel %vm4521_vm4, %v347_v6, %v351_v58  ;;  %v481_v41 = vrot.slane %v480_v24, 4  ;;  %v356_v42 = vrot.slane %v354_v26, 4  ;;  %5639 = vst [vmem:[#allocation14_spill] sm:$0xff] %v4735_v15 }
  0x37   : > { %v373_v44 = vshll.u32 %v4617_v23, 16  ;;  %v4640_v46 = vcombine.low %v342_v19, %v352_v40  ;;  %v491_v47 = vrot.slane %v490_v29, 4  ;;  %v359_v49 = vrot.slane %v357_v30, 5  ;;  %4233 = vmatprep.subr.msk.bf16.mxu1 %vm764_vm0, %v4623_v28  ;;  %v4663_v19 = vld [vmem:[%s4471_s15 + $0x34] sm:$0xf] }
  0x38   : > { %v365_v50 = vrot.slane %v363_v34, 5  ;;  %v486_v5 = vsel %vm4521_vm4, %v481_v41, %v485_v21  ;;  %v369_v54 = vrot.slane %v367_v35, 4  ;;  %v498_v58 = vshrl.u32 %v4631_v36, 16  ;;  %v4673_v41 = vld [vmem:[%s4471_s15 + $0x38] sm:$0x1] }
  0x39   : > { %5633 = vst [vmem:[#allocation8_spill] sm:$0xff] %v4640_v46  ;;  %v375_v55 = vrot.slane %v373_v44, 5  ;;  %3611 = vmatprep.mubr.msk.bf16.mxu0 %vm715_vm3, %v4640_v46  ;;  %v496_v59 = vsel %vm4521_vm4, %v491_v47, %v495_v25  ;;  %v360_v60 = vor.u32 %v359_v49, %v356_v42  ;;  %v501_v61 = vshll.u32 %v4631_v36, 16  ;;  %v4677_v44 = vld [vmem:[%s4471_s15 + $0x78] sm:$0xf] }
  0x3a   : > { %v507_v62 = vshll.u32 %v4638_v45, 16  ;;  %v4659_v2 = vcombine.low %v486_v5, %v496_v59  ;;  %v370_v3 = vor.u32 %v369_v54, %v365_v50  ;;  %v500_v9 = vrot.slane %v498_v58, 4  ;;  %v4682_v58 = vld [vmem:[%s4471_s15 + $0x7c] sm:$0xf] }
  0x3b   : > { %v511_v10 = vshrl.u32 %v4638_v45, 16  ;;  %v361_v21 = vrot.slane %v360_v60, 4  ;;  %v503_v22 = vrot.slane %v501_v61, 5  ;;  %v517_v24 = vshll.u32 %v4647_v57, 16 }
  0x3c   : > { %5634 = vst [vmem:[#allocation9_spill] sm:$0xff] %v4659_v2  ;;  %v509_v6 = vrot.slane %v507_v62, 5  ;;  %3623 = vmatprep.mubr.msk.bf16.mxu1 %vm715_vm3, %v4659_v2  ;;  %v371_v25 = vrot.slane %v370_v3, 4  ;;  %v378_v29 = vshrl.u32 %v4657_v0, 16  ;;  %v381_v30 = vshll.u32 %v4657_v0, 16 }
  0x3d   : > { %v513_v26 = vrot.slane %v511_v10, 4  ;;  %v366_v34 = vsel %vm4521_vm4, %v361_v21, %v365_v50  ;;  %v504_v35 = vor.u32 %v503_v22, %v500_v9  ;;  %v519_v40 = vrot.slane %v517_v24, 5  ;;  %v4689_v10 = vld [vmem:[%s4471_s15 + $0x80] sm:$0x1] }
  0x3e   : > { %v387_v42 = vshll.u32 %v4663_v19, 16  ;;  %v376_v47 = vsel %vm4521_vm4, %v371_v25, %v375_v55  ;;  %v380_v5 = vrot.slane %v378_v29, 4  ;;  %v383_v54 = vrot.slane %v381_v30, 5  ;;  %5636 = vst [vmem:[#allocation11_spill] sm:$0xff] %v4689_v10 }
  0x3f   : > { %v514_v49 = vor.u32 %v513_v26, %v509_v6  ;;  %v4684_v59 = vcombine.low %v366_v34, %v376_v47  ;;  %v505_v50 = vrot.slane %v504_v35, 4  ;;  %v391_v61 = vshrl.u32 %v4663_v19, 16  ;;  %v4699_v26 = vld [vmem:[%s4471_s15 + $0x3c] sm:$0xf] }
  0x40   : > { %v389_v60 = vrot.slane %v387_v42, 5  ;;  %v384_v3 = vor.u32 %v383_v54, %v380_v5  ;;  %v397_v9 = vshll.u32 %v4673_v41, 16  ;;  %v522_v55 = vshrl.u32 %v4677_v44, 16  ;;  %v4704_v42 = vld [vmem:[%s4471_s15 + $0x40] sm:$0xf] }
  0x41   : > { %5635 = vst [vmem:[#allocation10_spill] sm:$0xff] %v4684_v59  ;;  %v515_v62 = vrot.slane %v514_v49, 4  ;;  %3612 = vmatmul.mubr.msk.bf16.gmra.mrb[4].mxu0 %vm715_vm3, %v4684_v59  ;;  %v510_v21 = vsel %vm4521_vm4, %v505_v50, %v509_v6  ;;  %v393_v22 = vrot.slane %v391_v61, 4  ;;  %v525_v24 = vshll.u32 %v4677_v44, 16 }
  0x42   : > { %v531_v25 = vshll.u32 %v4682_v58, 16  ;;  %v385_v30 = vrot.slane %v384_v3, 4  ;;  %v399_v34 = vrot.slane %v397_v9, 5  ;;  %v524_v35 = vrot.slane %v522_v55, 4  ;;  %v4716_v9 = vld [vmem:[%s4471_s15 + $0x44] sm:$0x1] }
  0x43   : > { %v520_v29 = vsel %vm4521_vm4, %v515_v62, %v519_v40  ;;  %v394_v49 = vor.u32 %v393_v22, %v389_v60  ;;  %v527_v6 = vrot.slane %v525_v24, 5  ;;  %v535_v50 = vshrl.u32 %v4682_v58, 16 }
  0x44   : > { %v4706_v47 = vcombine.low %v510_v21, %v520_v29  ;;  %v533_v5 = vrot.slane %v531_v25, 5  ;;  %v390_v54 = vsel %vm4521_vm4, %v385_v30, %v389_v60  ;;  %v541_v61 = vshll.u32 %v4689_v10, 16  ;;  %v4722_v29 = vld [vmem:[%s4471_s15 + $0x84] sm:$0xf] }
  0x45   : > { %v402_v40 = vshrl.u32 %v4699_v26, 16  ;;  %v395_v62 = vrot.slane %v394_v49, 4  ;;  %v528_v3 = vor.u32 %v527_v6, %v524_v35  ;;  %v405_v55 = vshll.u32 %v4699_v26, 16  ;;  %v4727_v6 = vld [vmem:[%s4471_s15 + $0x88] sm:$0xf] }
  0x46   : > { %5637 = vst [vmem:[#allocation12_spill] sm:$0xff] %v4706_v47  ;;  %3624 = vmatmul.mubr.msk.bf16.gmra.mrb[4].mxu1 %vm715_vm3, %v4706_v47  ;;  %v411_v21 = vshll.u32 %v4704_v42, 16  ;;  %v537_v22 = vrot.slane %v535_v50, 4  ;;  %v543_v60 = vrot.slane %v541_v61, 5  ;;  %v415_v25 = vshrl.u32 %v4704_v42, 16 }
  0x47   : > { %v404_v24 = vrot.slane %v402_v40, 4  ;;  %v400_v30 = vsel %vm4521_vm4, %v395_v62, %v399_v34  ;;  %v529_v37 = vrot.slane %v528_v3, 4  ;;  %v407_v49 = vrot.slane %v405_v55, 5 }
  0x48   : > { %v413_v35 = vrot.slane %v411_v21, 5  ;;  %v4729_v52 = vcombine.low %v390_v54, %v400_v30  ;;  %v538_v47 = vor.u32 %v537_v22, %v533_v5  ;;  %v417_v2 = vrot.slane %v415_v25, 4 }
  0x49   : > { %v421_v50 = vshll.u32 %v4716_v9, 16  ;;  %v534_v61 = vsel %vm4521_vm4, %v529_v37, %v533_v5  ;;  %v408_v40 = vor.u32 %v407_v49, %v404_v24  ;;  %v546_v34 = vshrl.u32 %v4722_v29, 16  ;;  %v4744_v24 = vld [vmem:[%s4471_s15 + $0x90] sm:$0xf] }
  0x4a   : > { %5638 = vst [vmem:[#allocation13_spill] sm:$0xff] %v4729_v52  ;;  %v549_v62 = vshll.u32 %v4722_v29, 16  ;;  %3615 = vmatprep.mubr.msk.bf16.mxu0 %vm715_vm3, %v4729_v52  ;;  %v539_v54 = vrot.slane %v538_v47, 4  ;;  %v418_v3 = vor.u32 %v417_v2, %v413_v35  ;;  %v555_v21 = vshll.u32 %v4727_v6, 16  ;;  %v4750_v2 = vld [vmem:[%s4471_s15 + $0x94] sm:$0xf] }
  0x4b   : > { %v423_v55 = vrot.slane %v421_v50, 5  ;;  %v409_v22 = vrot.slane %v408_v40, 4  ;;  %v548_v25 = vrot.slane %v546_v34, 4  ;;  %v559_v5 = vshrl.u32 %v4727_v6, 16 }
  0x4c   : > { %v551_v37 = vrot.slane %v549_v62, 5  ;;  %v544_v30 = vsel %vm4521_vm4, %v539_v54, %v543_v60  ;;  %v419_v49 = vrot.slane %v418_v3, 4  ;;  %v557_v12 = vrot.slane %v555_v21, 5  ;;  %v4764_v21 = vld [vmem:[%s4471_s15 + $0x9c] sm:$0xf] }
  0x4d   : > { %v565_v47 = vshll.u32 %v4735_v15, 16  ;;  %v4752_v50 = vcombine.low %v534_v61, %v544_v30  ;;  %v414_v40 = vsel %vm4521_vm4, %v409_v22, %v413_v35  ;;  %v561_v62 = vrot.slane %v559_v5, 4  ;;  %5642 = vst [vmem:[#allocation17_spill] sm:$0xff] %v4764_v21 }
  0x4e   : > { %v552_v34 = vor.u32 %v551_v37, %v548_v25  ;;  %v424_v52 = vsel %vm4521_vm4, %v419_v49, %v423_v55  ;;  %v570_v54 = vshrl.u32 %v4744_v24, 16  ;;  %v573_v3 = vshll.u32 %v4744_v24, 16  ;;  %v4774_v49 = vld [vmem:[%s4471_s15 + $0xa0] sm:$0xf] }
  0x4f   : > { %5640 = vst [vmem:[#allocation15_spill] sm:$0xff] %v4752_v50  ;;  %v567_v60 = vrot.slane %v565_v47, 5  ;;  %3627 = vmatprep.mubr.msk.bf16.mxu1 %vm715_vm3, %v4752_v50  ;;  %v4768_v35 = vcombine.low %v414_v40, %v424_v52  ;;  %v562_v22 = vor.u32 %v561_v62, %v557_v12  ;;  %v579_v25 = vshll.u32 %v4750_v2, 16 }
  0x50   : > { %v553_v61 = vrot.slane %v552_v34, 4  ;;  %v572_v37 = vrot.slane %v570_v54, 4  ;;  %v575_v55 = vrot.slane %v573_v3, 5  ;;  %v583_v5 = vshrl.u32 %v4750_v2, 16  ;;  %v4781_v34 = vld [vmem:[%s4471_s15 + $0xa4] sm:$0x1] }
  0x51   : > { %5643 = vst [vmem:[#allocation18_spill] sm:$0xff] %v4768_v35  ;;  %v589_v30 = vshll.u32 %v4757_v4, 16  ;;  %3616 = vmatmul.mubr.msk.bf16.gmra.mrb[8].mxu0 %vm715_vm3, %v4768_v35  ;;  %v563_v47 = vrot.slane %v562_v22, 4  ;;  %v581_v40 = vrot.slane %v579_v25, 5  ;;  %5644 = vst [vmem:[#allocation19_spill] sm:$0xff] %v4781_v34  ;;  %v594_v62 = vshrl.u32 %v4764_v21, 16 }
  0x52   : > { %v558_v52 = vsel %vm4521_vm4, %v553_v61, %v557_v12  ;;  %v576_v54 = vor.u32 %v575_v55, %v572_v37  ;;  %v585_v3 = vrot.slane %v583_v5, 4  ;;  %3743 = vmatprep.mubr.msk.bf16.mxu0 %vm715_vm3, %v4581_v39  ;;  %v597_v59 = vshll.u32 %v4764_v21, 16  ;;  %v4788_v4 = vld [vmem:[%s4471_s15 + $0xa8] sm:$0xf] }
  0x53   : > { %v591_v50 = vrot.slane %v589_v30, 5  ;;  %5645 = vst [vmem:[#allocation20_spill] sm:$0xff] %v4788_v4  ;;  %v568_v12 = vsel %vm4521_vm4, %v563_v47, %v567_v60  ;;  %v596_v61 = vrot.slane %v594_v62, 4  ;;  %v603_v22 = vshll.u32 %v4774_v49, 16  ;;  %v4797_v30 = vld [vmem:[%s4471_s15 + $0xac] sm:$0xf] }
  0x54   : > { %v607_v25 = vshrl.u32 %v4774_v49, 16  ;;  %v4794_v37 = vcombine.low %v558_v52, %v568_v12  ;;  %v577_v55 = vrot.slane %v576_v54, 4  ;;  %v586_v5 = vor.u32 %v585_v3, %v581_v40  ;;  %v4806_v54 = vld [vmem:[%s4471_s15 + $0xb0] sm:$0x1]  ;;  %v4812_v3 = vld [vmem:[%s5585_s1 + $0xc] sm:$0x3] }
  0x55   : > { %v599_v39 = vrot.slane %v597_v59, 5  ;;  %v605_v35 = vrot.slane %v603_v22, 5  ;;  %v613_v10 = vshll.u32 %v4781_v34, 16  ;;  %v618_v60 = vshrl.u32 %v4788_v4, 16  ;;  %5647 = vst [vmem:[#allocation22_spill] sm:$0xff] %v4806_v54 }
  0x56   : > { %5646 = vst [vmem:[#allocation21_spill] sm:$0xff] %v4794_v37  ;;  %v609_v15 = vrot.slane %v607_v25, 4  ;;  %3628 = vmatmul.mubr.msk.bf16.gmra.mrb[8].mxu1 %vm715_vm3, %v4794_v37  ;;  %v582_v52 = vsel %vm4521_vm4, %v577_v55, %v581_v40  ;;  %v587_v47 = vrot.slane %v586_v5, 4  ;;  %v621_v59 = vshll.u32 %v4788_v4, 16  ;;  %v4816_v34 = vld [vmem:[%s4471_s15 + $0xb4] sm:$0xf] }
  0x57   : > { %v600_v62 = vor.u32 %v599_v39, %v596_v61  ;;  %v615_v22 = vrot.slane %v613_v10, 5  ;;  %v620_v25 = vrot.slane %v618_v60, 4  ;;  %v627_v37 = vshll.u32 %v4797_v30, 16  ;;  %5648 = vst [vmem:[#allocation23_spill] sm:$0xff] %v4816_v34  ;;  %v4822_v39 = vld [vmem:[%s4471_s15 + $0xb8] sm:$0xf] }
  0x58   : > { %v610_v12 = vor.u32 %v609_v15, %v605_v35  ;;  %v592_v40 = vsel %vm4521_vm4, %v587_v47, %v591_v50  ;;  %v623_v55 = vrot.slane %v621_v59, 5  ;;  %v631_v5 = vshrl.u32 %v4797_v30, 16 }
  0x59   : > { %v601_v61 = vrot.slane %v600_v62, 4  ;;  %v4824_v4 = vcombine.low %v582_v52, %v592_v40  ;;  %3744 = vmatmul.mubr.msk.bf16.vlgmr.msra.gmra.mrb[12].mxu0 %vm715_vm3, %v4640_v46  ;;  %v629_v15 = vrot.slane %v627_v37, 5  ;;  %v637_v10 = vshll.u32 %v4806_v54, 16  ;;  %v4833_v62 = vld [vmem:[%s4471_s15 + $0xbc] sm:$0x1] }
  0x5a   : > { %v611_v21 = vrot.slane %v610_v12, 4  ;;  %3776 = vmatpush3.bf16.msra.mxu0 %v4506_v18  ;;  %v624_v50 = vor.u32 %v623_v55, %v620_v25  ;;  %v633_v47 = vrot.slane %v631_v5, 4  ;;  %5650 = vst [vmem:[#allocation25_spill] sm:$0xff] %v4833_v62  ;;  %v642_v59 = vshrl.u32 %v4816_v34, 16 }
  0x5b   : > { %5649 = vst [vmem:[#allocation24_spill] sm:$0xff] %v4824_v4  ;;  %v606_v60 = vsel %vm4521_vm4, %v601_v61, %v605_v35  ;;  %3631 = vmatprep.mubr.msk.bf16.mxu1 %vm715_vm3, %v4824_v4  ;;  %v639_v37 = vrot.slane %v637_v10, 5  ;;  %v645_v12 = vshll.u32 %v4816_v34, 16  ;;  %v651_v40 = vshll.u32 %v4822_v39, 16  ;;  %4238 = vmatprep.subr.msk.bf16.mxu0 %vm764_vm0, %v4812_v3 }
  0x5c   : > { %v616_v52 = vsel %vm4521_vm4, %v611_v21, %v615_v22  ;;  %v625_v35 = vrot.slane %v624_v50, 4  ;;  %v634_v25 = vor.u32 %v633_v47, %v629_v15  ;;  %v644_v61 = vrot.slane %v642_v59, 4  ;;  %v3048_v21 = vld [vmem:[%s5587_s3 + $0x10] sm:$0xff] }
  0x5d   : > { %v4844_v18 = vcombine.low %v606_v60, %v616_v52  ;;  %v647_v55 = vrot.slane %v645_v12, 5  ;;  %v653_v5 = vrot.slane %v651_v40, 5  ;;  %v655_v4 = vshrl.u32 %v4822_v39, 16 }
  0x5e   : > { %v661_v46 = vshll.u32 %v4833_v62, 16  ;;  %v630_v22 = vsel %vm4521_vm4, %v625_v35, %v629_v15  ;;  %v635_v10 = vrot.slane %v634_v25, 4  ;;  %v3273_v60 = vrot.slane %v4514_v31, 9 }
  0x5f   : > { %5651 = vst [vmem:[#allocation26_spill] sm:$0xff] %v4844_v18  ;;  %3632 = vmatmul.mubr.msk.bf16.gmra.mrb[12].mxu1 %vm715_vm3, %v4844_v18  ;;  %v1249_v50 = vrot.slane %v4517_v32, 5  ;;  %v648_v47 = vor.u32 %v647_v55, %v644_v61  ;;  %v657_v59 = vrot.slane %v655_v4, 4  ;;  %v1252_v12 = vrot.slane %v4528_v43, 5 }
  0x60   : > { %v663_v52 = vrot.slane %v661_v46, 5  ;;  %v640_v40 = vsel %vm4521_vm4, %v635_v10, %v639_v37  ;;  %v3274_v54 = vrot.slane %v4557_v11, 9  ;;  %v1256_v34 = vrot.slane %v4562_v20, 5 }
  0x61   : > { %v1250_v62 = vsel %vm4850_vm7, %v3273_v60, %v1249_v50  ;;  %v1251_v18 = vrot.slane %v1249_v50, 4  ;;  %v4866_v15 = vcombine.low %v630_v22, %v640_v40  ;;  %v649_v35 = vrot.slane %v648_v47, 4 }
  0x62   : > { %v658_v25 = vor.u32 %v657_v59, %v653_v5  ;;  %v4873_v43 = vcombine.low %v4514_v31, %v4517_v32  ;;  %v3275_v46 = vrot.slane %v4602_v1, 9  ;;  %v1263_v37 = vrot.slane %v4610_v13, 5 }
  0x63   : > { %v1253_v4 = vsel %vm4850_vm7, %v1251_v18, %v1252_v12  ;;  %3635 = vmatprep.mubr.msk.bf16.mxu1 %vm715_vm3, %v4866_v15  ;;  %v654_v61 = vsel %vm4521_vm4, %v649_v35, %v653_v5  ;;  %v1257_v18 = vsel %vm4850_vm7, %v3274_v54, %v1256_v34  ;;  %v1258_v10 = vrot.slane %v1256_v34, 4 }
  0x64   : > { %v659_v55 = vrot.slane %v658_v25, 4  ;;  %v4881_v22 = vcombine.low %v1250_v62, %v1253_v4  ;;  %v1264_v31 = vsel %vm4850_vm7, %v3275_v46, %v1263_v37  ;;  %v1265_v32 = vrot.slane %v1263_v37, 4 }
  0x65   : > { %v1266_v60 = vrot.slane %v4617_v23, 5  ;;  %v3276_v5 = vrot.slane %v4657_v0, 9  ;;  %v1270_v62 = vrot.slane %v4663_v19, 5  ;;  %v1273_v47 = vrot.slane %v4673_v41, 5 }
  0x66   : > { %v664_v50 = vsel %vm4521_vm4, %v659_v55, %v663_v52  ;;  %3777 = vmatprep.mubr.msk.bf16.mxu0 %vm715_vm3, %v4881_v22  ;;  %v5654_v34 = vrot.slane %v4571_v27, 5  ;;  %v4905_v52 = vcombine.low %v4557_v11, %v4562_v20  ;;  %v2303_v40 = vsel %vm764_vm0, %v4812_v3, 0  ;;  %v4925_v3 = vld [vmem:[%s5585_s1 + $0xe] sm:$0x3] }
  0x67   : > { %v4895_v54 = vcombine.low %v654_v61, %v664_v50  ;;  %v1267_v23 = vsel %vm4850_vm7, %v1265_v32, %v1266_v60  ;;  %v1272_v35 = vrot.slane %v1270_v62, 4  ;;  %v4917_v27 = vcombine.low %v4602_v1, %v4610_v13 }
  0x68   : > { %v1260_v59 = vsel %vm4850_vm7, %v1258_v10, %v5654_v34  ;;  %v4911_v41 = vcombine.low %v1264_v31, %v1267_v23  ;;  %v3277_v25 = vrot.slane %v4699_v26, 9  ;;  %v1277_v11 = vrot.slane %v4704_v42, 5 }
  0x69   : > { %v4907_v12 = vcombine.low %v1257_v18, %v1260_v59  ;;  %3636 = vmatmul.mubr.msk.bf16.gmra.mrb[16].mxu1 %vm715_vm3, %v4895_v54  ;;  %v1280_v20 = vrot.slane %v4716_v9, 5  ;;  %v5655_v4 = vcombine.low %v4485_v7, %v4488_v8  ;;  %v1271_v1 = vsel %vm4850_vm7, %v3276_v5, %v1270_v62 }
  0x6a   : > { %v1274_v13 = vsel %vm4850_vm7, %v1272_v35, %v1273_v47  ;;  %v1279_v9 = vrot.slane %v1277_v11, 4  ;;  %v1284_v46 = vrot.slane %v4499_v16, 5  ;;  %v1278_v37 = vsel %vm4850_vm7, %v3277_v25, %v1277_v11 }
  0x6b   : > { %3778 = vmatmul.mubr.msk.bf16.vlgmr.msra.gmra.mrb[12].mxu0 %vm715_vm3, %v4907_v12  ;;  %3641 = vmatprep.mubr.msk.bf16.mxu1 %vm715_vm3, %v5655_v4  ;;  %v1291_v7 = vrot.slane %v4542_v56, 5  ;;  %v4947_v61 = vcombine.low %v1271_v1, %v1274_v13  ;;  %v3278_v55 = vrot.slane %v4496_v14, 9  ;;  %v1287_v18 = vrot.slane %v4502_v17, 5 }
  0x6c   : > { %3810 = vmatpush3.bf16.msra.mxu0 %v2303_v40  ;;  %3781 = vmatprep.mubr.msk.bf16.mxu0 %vm715_vm3, %v4911_v41  ;;  %v1281_v8 = vsel %vm4850_vm7, %v1279_v9, %v1280_v20  ;;  %v1451_v10 = vsel %vm764_vm0, %v4623_v28, 0  ;;  %v1286_v32 = vrot.slane %v1284_v46, 4  ;;  %v3279_v60 = vrot.slane %v4539_v51, 9  ;;  %v4965_v28 = vld [vmem:[%s5585_s1 + $0x6] sm:$0x3] }
  0x6d   : > { %4239 = vmatprep.subr.msk.bf16.mxu0 %vm764_vm0, %v4925_v3  ;;  %v4953_v31 = vcombine.low %v1278_v37, %v1281_v8  ;;  %v1293_v50 = vrot.slane %v1291_v7, 4  ;;  %v1294_v5 = vrot.slane %v4549_v63, 5  ;;  %v3281_v62 = vrot.slane %v4631_v36, 9  ;;  %v5656_v8 = vld [vmem:[#allocation17_spill] sm:$0xff] }
  0x6e   : > { %v1305_v47 = vrot.slane %v4638_v45, 5  ;;  %v1308_v17 = vrot.slane %v4647_v57, 5  ;;  %v1285_v63 = vsel %vm4850_vm7, %v3278_v55, %v1284_v46  ;;  %v1298_v34 = vrot.slane %v4586_v48, 5 }
  0x6f   : > { %v1288_v57 = vsel %vm4850_vm7, %v1286_v32, %v1287_v18  ;;  %v4982_v40 = vcombine.low %v4631_v36, %v4638_v45  ;;  %v1292_v35 = vsel %vm4850_vm7, %v3279_v60, %v1291_v7  ;;  %v1295_v25 = vsel %vm4850_vm7, %v1293_v50, %v1294_v5  ;;  %v5657_v5 = vld [vmem:[#allocation11_spill] sm:$0xff] }
  0x70   : > { %v1306_v59 = vsel %vm4850_vm7, %v3281_v62, %v1305_v47  ;;  %v1307_v23 = vrot.slane %v1305_v47, 4  ;;  %v4992_v20 = vcombine.low %v1285_v63, %v1288_v57  ;;  %v4996_v4 = vcombine.low %v4657_v0, %v4663_v19  ;;  %v5658_v63 = vld [vmem:[#allocation14_spill] sm:$0xff] }
  0x71   : > { %3642 = vmatmul.mubr.msk.bf16.vlgmr.msra.gmra.mrb[20].mxu1 %vm715_vm3, %v4873_v43  ;;  %v3280_v36 = vrot.slane %v4579_v38, 9  ;;  %v5001_v1 = vcombine.low %v1292_v35, %v1295_v25  ;;  %v1300_v13 = vrot.slane %v1298_v34, 4  ;;  %v1301_v9 = vrot.slane %v4594_v53, 5 }
  0x72   : > { %3674 = vmatpush3.bf16.msra.mxu1 %v1451_v10  ;;  %3645 = vmatprep.mubr.msk.bf16.mxu1 %vm715_vm3, %v4905_v52  ;;  %v1309_v11 = vsel %vm4850_vm7, %v1307_v23, %v1308_v17  ;;  %v5006_v46 = vcombine.low %v4677_v44, %v4682_v58  ;;  %v5010_v37 = vcombine.low %v4722_v29, %v4727_v6  ;;  %v1312_v19 = vrot.slane %v4682_v58, 5 }
  0x73   : > { %3782 = vmatmul.mubr.msk.bf16.gmra.mrb[16].mxu0 %vm715_vm3, %v4947_v61  ;;  %4234 = vmatprep.subr.msk.bf16.mxu1 %vm764_vm0, %v4965_v28  ;;  %v4999_v45 = vcombine.low %v1306_v59, %v1309_v11  ;;  %v1299_v53 = vsel %vm4850_vm7, %v3280_v36, %v1298_v34  ;;  %v1302_v0 = vsel %vm4850_vm7, %v1300_v13, %v1301_v9  ;;  %v1319_v18 = vrot.slane %v4727_v6, 5  ;;  %v5659_v34 = vld [vmem:[#allocation20_spill] sm:$0xff] }
  0x74   : > { %3785 = vmatprep.mubr.msk.bf16.mxu0 %vm715_vm3, %v4953_v31  ;;  %v5027_v7 = vcombine.low %v4744_v24, %v4750_v2  ;;  %v5031_v55 = vcombine.low %v5656_v8, %v4774_v49  ;;  %v5036_v10 = vcombine.low %v4699_v26, %v4704_v42  ;;  %v5038_v32 = vcombine.low %v1299_v53, %v1302_v0  ;;  %v5660_v42 = vld [vmem:[#allocation23_spill] sm:$0xff]  ;;  %v5661_v9 = vld [vmem:[#allocation16_spill] sm:$0xff] }
  0x75   : > { %v5042_v60 = vcombine.low %v4496_v14, %v4499_v16  ;;  %v3282_v58 = vrot.slane %v4677_v44, 9  ;;  %v1314_v50 = vrot.slane %v1312_v19, 4  ;;  %v1315_v62 = vrot.slane %v5657_v5, 5 }
  0x76   : > { %v3283_v47 = vrot.slane %v4722_v29, 9  ;;  %v1321_v17 = vrot.slane %v1319_v18, 4  ;;  %v1322_v6 = vrot.slane %v5658_v63, 5  ;;  %v5050_v26 = vcombine.low %v5659_v34, %v4797_v30 }
  0x77   : > { %v5054_v57 = vcombine.low %v5660_v42, %v4822_v39  ;;  %v1313_v14 = vsel %vm4850_vm7, %v3282_v58, %v1312_v19  ;;  %v1316_v16 = vsel %vm4850_vm7, %v1314_v50, %v1315_v62  ;;  %v1326_v44 = vrot.slane %v4750_v2, 5  ;;  %v5662_v19 = vld [vmem:[#allocation19_spill] sm:$0xff] }
  0x78   : > { %v1320_v29 = vsel %vm4850_vm7, %v3283_v47, %v1319_v18  ;;  %v1323_v59 = vsel %vm4850_vm7, %v1321_v17, %v1322_v6  ;;  %v1333_v23 = vrot.slane %v4774_v49, 5  ;;  %v5076_v35 = vcombine.low %v4539_v51, %v4542_v56  ;;  %v5663_v47 = vld [vmem:[#allocation22_spill] sm:$0xff] }
  0x79   : > { %3646 = vmatmul.mubr.msk.bf16.gmra.mrb[24].mxu1 %vm715_vm3, %v4917_v27  ;;  %v5078_v25 = vcombine.low %v1313_v14, %v1316_v16  ;;  %v5082_v11 = vcombine.low %v4579_v38, %v4586_v48  ;;  %v5084_v36 = vcombine.low %v1320_v29, %v1323_v59  ;;  %v3284_v2 = vrot.slane %v4744_v24, 9  ;;  %v5664_v14 = vld [vmem:[#allocation25_spill] sm:$0xff] }
  0x7a   : > { %3649 = vmatprep.mubr.msk.bf16.mxu1 %vm715_vm3, %v4996_v4  ;;  %v1328_v13 = vrot.slane %v1326_v44, 4  ;;  %v1329_v53 = vrot.slane %v5661_v9, 5  ;;  %v3285_v0 = vrot.slane %v5656_v8, 9  ;;  %v1335_v49 = vrot.slane %v1333_v23, 4  ;;  %v273_v29 = vld [vmem:[%s4471_s15 + $0xc8] sm:$0x1] }
  0x7b   : > { %3786 = vmatmul.mubr.msk.bf16.gmra.mrb[20].mxu0 %vm715_vm3, %v4992_v20  ;;  %v1336_v18 = vrot.slane %v5662_v19, 5  ;;  %v1327_v51 = vsel %vm4850_vm7, %v3284_v2, %v1326_v44  ;;  %v1340_v38 = vrot.slane %v4797_v30, 5  ;;  %v1347_v8 = vrot.slane %v4822_v39, 5  ;;  %v5115_v30 = vld [vmem:[%s4471_s15 + $0xc4] sm:$0xf] }
  0x7c   : > { %3789 = vmatprep.mubr.msk.bf16.mxu0 %vm715_vm3, %v5001_v1  ;;  %v1330_v56 = vsel %vm4850_vm7, %v1328_v13, %v1329_v53  ;;  %v1334_v48 = vsel %vm4850_vm7, %v3285_v0, %v1333_v23  ;;  %v3286_v5 = vrot.slane %v5659_v34, 9  ;;  %v1343_v17 = vrot.slane %v5663_v47, 5  ;;  %v5133_v44 = vld [vmem:[%s4471_s15 + $0xc0] sm:$0xf] }
  0x7d   : > { %v1337_v24 = vsel %vm4850_vm7, %v1335_v49, %v1336_v18  ;;  %v5108_v58 = vcombine.low %v1327_v51, %v1330_v56  ;;  %v1342_v62 = vrot.slane %v1340_v38, 4  ;;  %v3287_v63 = vrot.slane %v5660_v42, 9 }
  0x7e   : > { %v5110_v50 = vcombine.low %v1334_v48, %v1337_v24  ;;  %v1349_v6 = vrot.slane %v1347_v8, 4  ;;  %v1350_v16 = vrot.slane %v5664_v14, 5  ;;  %v2083_v39 = vrot.slane %v5115_v30, 5  ;;  %v4302_v48 = vld [vmem:[%s4471_s15 + $0x4] sm:$0xf] }
  0x7f   : > { %v1341_v34 = vsel %vm4850_vm7, %v3286_v5, %v1340_v38  ;;  %v1344_v42 = vsel %vm4850_vm7, %v1342_v62, %v1343_v17  ;;  %v1348_v59 = vsel %vm4850_vm7, %v3287_v63, %v1347_v8  ;;  %v3357_v13 = vrot.slane %v5133_v44, 9  ;;  %v4303_v14 = vld [vmem:[%s4471_s15 + $0x8] sm:$0x1] }
  0x80   : > { %v1351_v23 = vsel %vm4850_vm7, %v1349_v6, %v1350_v16  ;;  %v5140_v2 = vcombine.low %v1341_v34, %v1344_v42  ;;  %v2085_v9 = vrot.slane %v2083_v39, 4  ;;  %v2086_v53 = vrot.slane %v273_v29, 5 }
  0x81   : > { %3650 = vmatmul.mubr.msk.bf16.gmra.mrb[28].mxu1 %vm715_vm3, %v5036_v10  ;;  %v5143_v0 = vcombine.low %v1348_v59, %v1351_v23  ;;  %v1853_v49 = vshrl.u32 %v5133_v44, 16  ;;  %v1856_v19 = vshll.u32 %v5133_v44, 16  ;;  %v1862_v18 = vshll.u32 %v5115_v30, 16 }
  0x82   : > { %3653 = vmatprep.mubr.msk.bf16.mxu1 %vm715_vm3, %v5042_v60  ;;  %v1866_v51 = vshrl.u32 %v5115_v30, 16  ;;  %v2084_v56 = vsel %vm4850_vm7, %v3357_v13, %v2083_v39  ;;  %v2087_v38 = vsel %vm4850_vm7, %v2085_v9, %v2086_v53  ;;  %v1242_v24 = vrot.slane %v4302_v48, 5  ;;  %v4304_v39 = vld [vmem:[%s4471_s15] sm:$0xf]  ;;  %v4305_v48 = vld [vmem:[%s5585_s1 + $0x8] sm:$0x3] }
  0x83   : > { %3790 = vmatmul.mubr.msk.bf16.gmra.mrb[24].mxu0 %vm715_vm3, %v5038_v32  ;;  %v1855_v8 = vrot.slane %v1853_v49, 4  ;;  %v1858_v5 = vrot.slane %v1856_v19, 5  ;;  %v1864_v62 = vrot.slane %v1862_v18, 5  ;;  %v1872_v6 = vshll.u32 %v273_v29, 16 }
  0x84   : > { %3793 = vmatprep.mubr.msk.bf16.mxu0 %vm715_vm3, %v4999_v45  ;;  %v1868_v47 = vrot.slane %v1866_v51, 4  ;;  %v1245_v16 = vrot.slane %v4303_v14, 5  ;;  %v5163_v34 = vcombine.low %v2084_v56, %v2087_v38  ;;  %v3272_v42 = vrot.slane %v4304_v39, 9  ;;  %v3413_v38 = vld [vmem:[%s5585_s1 + $0x10] sm:$0x3] }
  0x85   : > { %v1859_v17 = vor.u32 %v1858_v5, %v1855_v8  ;;  %v1244_v59 = vrot.slane %v1242_v24, 4  ;;  %v1874_v9 = vrot.slane %v1872_v6, 5  ;;  %v2531_v56 = vsel %vm764_vm0, %v4925_v3, 0  ;;  %v5666_v5 = vld [vmem:[#allocation10_spill] sm:$0xff]  ;;  %v5673_v6 = vld [vmem:[#allocation12_spill] sm:$0xff] }
  0x86   : > { %v1869_v63 = vor.u32 %v1868_v47, %v1864_v62  ;;  %v1243_v19 = vsel %vm4850_vm7, %v3272_v42, %v1242_v24  ;;  %v1657_v3 = vsel %vm764_vm0, %v4965_v28, 0  ;;  %v5256_v28 = vld [vmem:[%s4471_s15 + $0xcc] sm:$0xf]  ;;  %v5259_v24 = vld [vmem:[%s4471_s15 + $0xd0] sm:$0xf]  ;;  %v2743_v8 = vsel %vm764_vm0, %v3413_v38, 0 }
  0x87   : > { %v1860_v23 = vrot.slane %v1859_v17, 4  ;;  %v1246_v18 = vsel %vm4850_vm7, %v1244_v59, %v1245_v16  ;;  %v5668_v47 = vld [vmem:[#allocation5_spill] sm:$0xff]  ;;  %v5669_v17 = vld [vmem:[#allocation18_spill] sm:$0xff]  ;;  %v2502_v39 = vshll.u32 %v5256_v28, 16  ;;  %v2512_v42 = vshrl.u32 %v5259_v24, 16  ;;  %v5676_v59 = vld [vmem:[#allocation24_spill] sm:$0xff] }
  0x88   : > { %v1870_v13 = vrot.slane %v1869_v63, 4  ;;  %v3289_v51 = vcombine.low %v1243_v19, %v1246_v18  ;;  %v5670_v63 = vld [vmem:[#allocation6_spill] sm:$0xff] }
  0x89   : > { %3654 = vmatmul.mubr.msk.bf16.gmra.mrb[0].mxu1 %vm715_vm3, %v5076_v35  ;;  %v1865_v53 = vsel %vm4521_vm4, %v1860_v23, %v1864_v62  ;;  %v5667_v62 = vld [vmem:[#allocation13_spill] sm:$0xff]  ;;  %v2508_v23 = vshll.u32 %v5259_v24, 16 }
  0x8a   : > { %3657 = vmatprep.mubr.msk.bf16.mxu1 %vm715_vm3, %v5082_v11  ;;  %v1875_v49 = vsel %vm4521_vm4, %v1870_v13, %v1874_v9  ;;  %v2504_v9 = vrot.slane %v2502_v39, 5 }
  0x8b   : > { %3794 = vmatmul.mubr.msk.bf16.gmra.mrb[28].mxu0 %vm715_vm3, %v5078_v25  ;;  %v5176_v29 = vcombine.low %v1865_v53, %v1875_v49  ;;  %v2514_v53 = vrot.slane %v2512_v42, 4  ;;  %v5325_v49 = vld [vmem:[%s4471_s15 + $0xd4] sm:$0x1] }
  0x8c   : > { %3797 = vmatprep.mubr.msk.bf16.mxu0 %vm715_vm3, %v5084_v36 }
  0x91   : > { %3658 = vmatmul.mubr.msk.bf16.gmra.mrb[4].mxu1 %vm715_vm3, %v4982_v40 }
  0x92   : > { %3661 = vmatprep.mubr.msk.bf16.mxu1 %vm715_vm3, %v5006_v46 }
  0x93   : > { %3798 = vmatmul.mubr.msk.bf16.gmra.mrb[32].mxu0 %vm715_vm3, %v5108_v58 }
  0x94   : > { %3801 = vmatprep.mubr.msk.bf16.mxu0 %vm715_vm3, %v5110_v50 }
  0x99   : > { %3662 = vmatmul.mubr.msk.bf16.gmra.mrb[8].mxu1 %vm715_vm3, %v5010_v37 }
  0x9a   : > { %3665 = vmatprep.mubr.msk.bf16.mxu1 %vm715_vm3, %v5027_v7 }
  0x9b   : > { %3802 = vmatmul.mubr.msk.bf16.gmra.mrb[36].mxu0 %vm715_vm3, %v5140_v2 }
  0x9c   : > { %3805 = vmatprep.mubr.msk.bf16.mxu0 %vm715_vm3, %v5143_v0 }
  0xa1   : > { %3666 = vmatmul.mubr.msk.bf16.gmra.mrb[12].mxu1 %vm715_vm3, %v5031_v55 }
  0xa2   : > { %3669 = vmatprep.mubr.msk.bf16.mxu1 %vm715_vm3, %v5050_v26 }
  0xa3   : > { %3806 = vmatmul.mubr.msk.bf16.gmra.mrb[40].mxu0 %vm715_vm3, %v5163_v34 }
  0xa4   : > { %3811 = vmatprep.mubr.msk.bf16.mxu0 %vm715_vm3, %v4905_v52 }
  0xa9   : > { %3670 = vmatmul.mubr.msk.bf16.gmra.mrb[16].mxu1 %vm715_vm3, %v5054_v57 }
  0xaa   : > { %3675 = vmatprep.mubr.msk.bf16.mxu1 %vm715_vm3, %v3289_v51  ;;  %v2518_v51 = vshll.u32 %v5325_v49, 16 }
  0xab   : > { %3812 = vmatmul.mubr.msk.bf16.vlgmr.msra.gmra.mrb[12].mxu0 %vm715_vm3, %v4917_v27 }
  0xac   : > { %3844 = vmatpush3.bf16.msra.mxu0 %v2531_v56  ;;  %3815 = vmatprep.mubr.msk.bf16.mxu0 %vm715_vm3, %v4996_v4 }
  0xad   : > { %4240 = vmatprep.subr.msk.bf16.mxu0 %vm764_vm0, %v3413_v38 }
  0xb1   : > { %3676 = vmatmul.mubr.msk.bf16.vlgmr.msra.gmra.mrb[20].mxu1 %vm715_vm3, %v4881_v22  ;;  %v5245_v22 = vcombine.low %v5133_v44, %v5115_v30  ;;  %v3377_v30 = vcombine.low %v5256_v28, %v5259_v24  ;;  %v5665_v44 = vld [vmem:[#allocation8_spill] sm:$0xff] }
  0xb2   : > { %3708 = vmatpush3.bf16.msra.mxu1 %v1657_v3  ;;  %3679 = vmatprep.mubr.msk.bf16.mxu1 %vm715_vm3, %v4907_v12 }
  0xb3   : > { %3816 = vmatmul.mubr.msk.bf16.gmra.mrb[16].mxu0 %vm715_vm3, %v5036_v10  ;;  %4236 = vmatprep.subr.msk.bf16.mxu1 %vm764_vm0, %v4305_v48 }
  0xb4   : > { %3819 = vmatprep.mubr.msk.bf16.mxu0 %vm715_vm3, %v5042_v60 }
  0xb9   : > { %3680 = vmatmul.mubr.msk.bf16.gmra.mrb[24].mxu1 %vm715_vm3, %v4911_v41 }
  0xba   : > { %3683 = vmatprep.mubr.msk.bf16.mxu1 %vm715_vm3, %v4947_v61 }
  0xbb   : > { %3820 = vmatmul.mubr.msk.bf16.gmra.mrb[20].mxu0 %vm715_vm3, %v5076_v35 }
  0xbc   : > { %3823 = vmatprep.mubr.msk.bf16.mxu0 %vm715_vm3, %v5082_v11 }
  0xc1   : > { %3684 = vmatmul.mubr.msk.bf16.gmra.mrb[28].mxu1 %vm715_vm3, %v4953_v31 }
  0xc2   : > { %3687 = vmatprep.mubr.msk.bf16.mxu1 %vm715_vm3, %v4992_v20 }
  0xc3   : > { %3824 = vmatmul.mubr.msk.bf16.gmra.mrb[24].mxu0 %vm715_vm3, %v4982_v40 }
  0xc4   : > { %3827 = vmatprep.mubr.msk.bf16.mxu0 %vm715_vm3, %v5006_v46 }
  0xc9   : > { %3688 = vmatmul.mubr.msk.bf16.gmra.mrb[0].mxu1 %vm715_vm3, %v5001_v1 }
  0xca   : > { %3691 = vmatprep.mubr.msk.bf16.mxu1 %vm715_vm3, %v5038_v32 }
  0xcb   : > { %3828 = vmatmul.mubr.msk.bf16.gmra.mrb[28].mxu0 %vm715_vm3, %v5010_v37 }
  0xcc   : > { %3831 = vmatprep.mubr.msk.bf16.mxu0 %vm715_vm3, %v5027_v7 }
  0xd1   : > { %3692 = vmatmul.mubr.msk.bf16.gmra.mrb[4].mxu1 %vm715_vm3, %v4999_v45 }
  0xd2   : > { %3695 = vmatprep.mubr.msk.bf16.mxu1 %vm715_vm3, %v5078_v25 }
  0xd3   : > { %3832 = vmatmul.mubr.msk.bf16.gmra.mrb[32].mxu0 %vm715_vm3, %v5031_v55 }
  0xd4   : > { %3835 = vmatprep.mubr.msk.bf16.mxu0 %vm715_vm3, %v5050_v26 }
  0xd9   : > { %3696 = vmatmul.mubr.msk.bf16.gmra.mrb[8].mxu1 %vm715_vm3, %v5084_v36 }
  0xda   : > { %3699 = vmatprep.mubr.msk.bf16.mxu1 %vm715_vm3, %v5108_v58 }
  0xdb   : > { %3836 = vmatmul.mubr.msk.bf16.gmra.mrb[36].mxu0 %vm715_vm3, %v5054_v57 }
  0xdc   : > { %3839 = vmatprep.mubr.msk.bf16.mxu0 %vm715_vm3, %v5245_v22 }
  0xe1   : > { %3700 = vmatmul.mubr.msk.bf16.gmra.mrb[12].mxu1 %vm715_vm3, %v5110_v50 }
  0xe2   : > { %3703 = vmatprep.mubr.msk.bf16.mxu1 %vm715_vm3, %v5140_v2 }
  0xe3   : > { %3840 = vmatmul.mubr.msk.bf16.gmra.mrb[40].mxu0 %vm715_vm3, %v3377_v30 }
  0xe4   : > { %3845 = vmatprep.mubr.msk.bf16.mxu0 %vm715_vm3, %v5665_v44 }
  0xe9   : > { %3704 = vmatmul.mubr.msk.bf16.gmra.mrb[16].mxu1 %vm715_vm3, %v5143_v0 }
  0xea   : > { %3709 = vmatprep.mubr.msk.bf16.mxu1 %vm715_vm3, %v4873_v43  ;;  %v5671_v43 = vld [vmem:[#allocation7_spill] sm:$0xff] }
  0xeb   : > { %3846 = vmatmul.mubr.msk.bf16.vlgmr.msra.gmra.mrb[12].mxu0 %vm715_vm3, %v5666_v5 }
  0xec   : > { %3878 = vmatpush3.bf16.msra.mxu0 %v2743_v8  ;;  %3849 = vmatprep.mubr.msk.bf16.mxu0 %vm715_vm3, %v5667_v62 }
  0xf1   : > { %3710 = vmatmul.mubr.msk.bf16.vlgmr.msra.gmra.mrb[20].mxu1 %vm715_vm3, %v4905_v52  ;;  %v5672_v52 = vld [vmem:[#allocation9_spill] sm:$0xff] }
  0xf2   : > { %3973 = vmatpush3.bf16.msra.mxu1 %v5668_v47  ;;  %3713 = vmatprep.mubr.msk.bf16.mxu1 %vm715_vm3, %v4917_v27  ;;  %v5674_v27 = vld [vmem:[#allocation15_spill] sm:$0xff] }
  0xf3   : > { %3850 = vmatmul.mubr.msk.bf16.gmra.mrb[16].mxu0 %vm715_vm3, %v5669_v17 }
  0xf4   : > { %3853 = vmatprep.mubr.msk.bf16.mxu0 %vm715_vm3, %v5670_v63 }
  0xf9   : > { %3714 = vmatmul.mubr.msk.bf16.gmra.mrb[24].mxu1 %vm715_vm3, %v4996_v4 }
  0xfa   : > { %3717 = vmatprep.mubr.msk.bf16.mxu1 %vm715_vm3, %v5036_v10 }
  0xfb   : > { %3854 = vmatmul.mubr.msk.bf16.gmra.mrb[20].mxu0 %vm715_vm3, %v5671_v43 }
  0xfc   : > { %3857 = vmatprep.mubr.msk.bf16.mxu0 %vm715_vm3, %v5672_v52 }
 0x101   : > { %3718 = vmatmul.mubr.msk.bf16.gmra.mrb[28].mxu1 %vm715_vm3, %v5042_v60  ;;  %v5675_v60 = vld [vmem:[#allocation21_spill] sm:$0xff] }
 0x102   : > { %3721 = vmatprep.mubr.msk.bf16.mxu1 %vm715_vm3, %v5076_v35  ;;  %v2499_v35 = vshrl.u32 %v5256_v28, 16 }
 0x103   : > { %3858 = vmatmul.mubr.msk.bf16.gmra.mrb[24].mxu0 %vm715_vm3, %v5673_v6  ;;  %v5304_v4 = vpop.f32.mrb[0].mxu0 }
 0x104   : > { %3861 = vmatprep.mubr.msk.bf16.mxu0 %vm715_vm3, %v5674_v27  ;;  %v5306_v14 = vpop.f32.mrb[1].mxu0  ;;  %v2501_v13 = vrot.slane %v2499_v35, 4 }
 0x105   : > { %v5308_v10 = vpop.f32.mrb[2].mxu0 }
 0x106   : > { %v5310_v16 = vpop.f32.mrb[3].mxu0  ;;  %v2505_v19 = vor.u32 %v2504_v9, %v2501_v13 }
 0x108   : > { %v2506_v3 = vrot.slane %v2505_v19, 4 }
 0x109   : > { %3722 = vmatmul.mubr.msk.bf16.gmra.mrb[0].mxu1 %vm715_vm3, %v5082_v11  ;;  %v2510_v11 = vrot.slane %v2508_v23, 5  ;;  %v4372_v23 = vmov 0.0  }
 0x10a   : > { %3725 = vmatprep.mubr.msk.bf16.mxu1 %vm715_vm3, %v4982_v40  ;;  %v5677_v40 = vld [vmem:[#allocation26_spill] sm:$0xff] }
 0x10b   : > { %3862 = vmatmul.mubr.msk.bf16.gmra.mrb[28].mxu0 %vm715_vm3, %v5675_v60  ;;  %v2515_v18 = vor.u32 %v2514_v53, %v2510_v11 }
 0x10c   : > { %3865 = vmatprep.mubr.msk.bf16.mxu0 %vm715_vm3, %v5676_v59 }
 0x10d   : > { %v2516_v48 = vrot.slane %v2515_v18, 4 }
 0x111   : > { %3726 = vmatmul.mubr.msk.bf16.gmra.mrb[4].mxu1 %vm715_vm3, %v5006_v46  ;;  %v2520_v46 = vrot.slane %v2518_v51, 5 }
 0x112   : > { %3729 = vmatprep.mubr.msk.bf16.mxu1 %vm715_vm3, %v5010_v37  ;;  %v2511_v37 = vsel %vm4521_vm4, %v2506_v3, %v2510_v11  ;;  %v5492_v11 = vld [vmem:[%s5586_s2] ss:$0 sm:$0xff] }
 0x113   : > { %3866 = vmatmul.mubr.msk.bf16.gmra.mrb[32].mxu0 %vm715_vm3, %v5677_v40  ;;  %v2521_v8 = vsel %vm4521_vm4, %v2516_v48, %v2520_v46 }
 0x114   : > { %3869 = vmatprep.mubr.msk.bf16.mxu0 %vm715_vm3, %v4866_v15  ;;  %v5336_v56 = vpop.f32.mrb[4].mxu0  ;;  %v3395_v47 = vcombine.low %v2511_v37, %v2521_v8 }
 0x115   : > { %v5338_v38 = vpop.f32.mrb[5].mxu0 }
 0x116   : > { %v5340_v30 = vpop.f32.mrb[6].mxu0 }
 0x117   : > { %v5342_v44 = vpop.f32.mrb[7].mxu0 }
 0x119   : > { %3730 = vmatmul.mubr.msk.bf16.gmra.mrb[8].mxu1 %vm715_vm3, %v5027_v7 }
 0x11a   : > { %3733 = vmatprep.mubr.msk.bf16.mxu1 %vm715_vm3, %v5031_v55 }
 0x11b   : > { %3870 = vmatmul.mubr.msk.bf16.gmra.mrb[36].mxu0 %vm715_vm3, %v4895_v54 }
 0x11c   : > { %3873 = vmatprep.mubr.msk.bf16.mxu0 %vm715_vm3, %v5176_v29 }
 0x121   : > { %3734 = vmatmul.mubr.msk.bf16.gmra.mrb[12].mxu1 %vm715_vm3, %v5050_v26 }
 0x122   : > { %3737 = vmatprep.mubr.msk.bf16.mxu1 %vm715_vm3, %v5054_v57  ;;  %v3049_v57 = vld [vmem:[%s5587_s3 + $0x18] sm:$0xff] }
 0x123   : > { %3874 = vmatmul.mubr.msk.bf16.gmra.mrb[40].mxu0 %vm715_vm3, %v3395_v47 }
 0x124   : > { %3879 = vmatprep.mubr.msk.bf16.mxu0 %vm715_vm3, %v4907_v12  ;;  %v5363_v7 = vpop.f32.mrb[8].mxu0  ;;  %v2729_v12 = vrot.slane %v5259_v24, 5 }
 0x125   : > { %v5365_v55 = vpop.f32.mrb[9].mxu0 }
 0x126   : > { %v5367_v35 = vpop.f32.mrb[10].mxu0 }
 0x127   : > { %v5369_v33 = vpop.f32.mrb[11].mxu0 }
 0x129   : > { %3738 = vmatmul.mubr.msk.bf16.gmra.mrb[16].mxu1 %vm715_vm3, %v5245_v22  ;;  %v3055_v22 = vld [vmem:[%s5587_s3 + $0x48] sm:$0xff] }
 0x12a   : > { %3747 = vmatprep.mubr.msk.bf16.mxu1 %vm715_vm3, %v5666_v5 }
 0x12b   : > { %3880 = vmatmul.mubr.msk.bf16.vlgmr.msra.gmra.mrb[12].mxu0 %vm715_vm3, %v4911_v41  ;;  %v3412_v41 = vrot.slane %v5256_v28, 9 }
 0x12c   : > { %3883 = vmatprep.mubr.msk.bf16.mxu0 %vm715_vm3, %v4947_v61  ;;  %v2731_v61 = vrot.slane %v2729_v12, 4 }
 0x131   : > { %3748 = vmatmul.mubr.msk.bf16.vlgmr.msra.gmra.mrb[24].mxu1 %vm715_vm3, %v5667_v62 }
 0x132   : > { %3751 = vmatprep.mubr.msk.bf16.mxu1 %vm715_vm3, %v5669_v17 }
 0x133   : > { %3884 = vmatmul.mubr.msk.bf16.gmra.mrb[16].mxu0 %vm715_vm3, %v4953_v31  ;;  %v2732_v31 = vrot.slane %v5325_v49, 5 }
 0x134   : > { %3887 = vmatprep.mubr.msk.bf16.mxu0 %vm715_vm3, %v4992_v20  ;;  %v2730_v20 = vsel %vm4850_vm7, %v3412_v41, %v2729_v12 }
 0x139   : > { %3752 = vmatmul.mubr.msk.bf16.gmra.mrb[28].mxu1 %vm715_vm3, %v5670_v63 }
 0x13a   : > { %3755 = vmatprep.mubr.msk.bf16.mxu1 %vm715_vm3, %v5671_v43  ;;  %v3056_v43 = vld [vmem:[%s5587_s3 + $0x50] sm:$0xff] }
 0x13b   : > { %3888 = vmatmul.mubr.msk.bf16.gmra.mrb[20].mxu0 %vm715_vm3, %v5001_v1 }
 0x13c   : > { %3891 = vmatprep.mubr.msk.bf16.mxu0 %vm715_vm3, %v5038_v32  ;;  %v4370_v32 = vmov 0.0|0.0  }
 0x13d   : > { %3946 = vmatprep.subr.bf16.mxu1 %v4370_v32 }
 0x141   : > { %3756 = vmatmul.mubr.msk.bf16.gmra.mrb[0].mxu1 %vm715_vm3, %v5672_v52  ;;  %v3057_v52 = vld [vmem:[%s5587_s3 + $0x58] sm:$0xff] }
 0x142   : > { %3759 = vmatprep.mubr.msk.bf16.mxu1 %vm715_vm3, %v5673_v6 }
 0x143   : > { %3892 = vmatmul.mubr.msk.bf16.gmra.mrb[24].mxu0 %vm715_vm3, %v4999_v45  ;;  %v2733_v45 = vsel %vm4850_vm7, %v2731_v61, %v2732_v31 }
 0x144   : > { %3895 = vmatprep.mubr.msk.bf16.mxu0 %vm715_vm3, %v5078_v25  ;;  %v3414_v1 = vcombine.low %v2730_v20, %v2733_v45  ;;  %v3950_v25 = vpack.c.bf16 %v3049_v57, %v3048_v21 }
 0x149   : > { %3760 = vmatmul.mubr.msk.bf16.gmra.mrb[4].mxu1 %vm715_vm3, %v5674_v27 }
 0x14a   : > { %3763 = vmatprep.mubr.msk.bf16.mxu1 %vm715_vm3, %v5675_v60  ;;  %v3962_v60 = vpack.c.bf16 %v3057_v52, %v3056_v43 }
 0x14b   : > { %3896 = vmatmul.mubr.msk.bf16.gmra.mrb[28].mxu0 %vm715_vm3, %v5084_v36  ;;  %v3050_v36 = vld [vmem:[%s5587_s3 + $0x20] sm:$0xff] }
 0x14c   : > { %3899 = vmatprep.mubr.msk.bf16.mxu0 %vm715_vm3, %v5108_v58  ;;  %v3051_v58 = vld [vmem:[%s5587_s3 + $0x28] sm:$0xff] }
 0x151   : > { %3764 = vmatmul.mubr.msk.bf16.gmra.mrb[8].mxu1 %vm715_vm3, %v5676_v59  ;;  %v3060_v59 = vld [vmem:[%s5587_s3 + $0x70] sm:$0xff] }
 0x152   : > { %3767 = vmatprep.mubr.msk.bf16.mxu1 %vm715_vm3, %v5677_v40 }
 0x153   : > { %3900 = vmatmul.mubr.msk.bf16.gmra.mrb[32].mxu0 %vm715_vm3, %v5110_v50  ;;  %v3953_v50 = vpack.c.bf16 %v3051_v58, %v3050_v36 }
 0x154   : > { %3903 = vmatprep.mubr.msk.bf16.mxu0 %vm715_vm3, %v5140_v2  ;;  %v3052_v2 = vld [vmem:[%s5587_s3 + $0x30] sm:$0xff] }
 0x159   : > { %3768 = vmatmul.mubr.msk.bf16.gmra.mrb[12].mxu1 %vm715_vm3, %v4866_v15  ;;  %v3046_v15 = vld [vmem:[%s5587_s3] sm:$0xff] }
 0x15a   : > { %3771 = vmatprep.mubr.msk.bf16.mxu1 %vm715_vm3, %v4895_v54  ;;  %v3047_v54 = vld [vmem:[%s5587_s3 + $0x8] sm:$0xff] }
 0x15b   : > { %3904 = vmatmul.mubr.msk.bf16.gmra.mrb[36].mxu0 %vm715_vm3, %v5143_v0  ;;  %v3947_v26 = vpack.c.bf16 %v3047_v54, %v3046_v15  ;;  %v3053_v0 = vld [vmem:[%s5587_s3 + $0x38] sm:$0xff] }
 0x15c   : > { %3907 = vmatprep.mubr.msk.bf16.mxu0 %vm715_vm3, %v5163_v34  ;;  %v3956_v34 = vpack.c.bf16 %v3053_v0, %v3052_v2 }
 0x15d   : > { %3948 = vmatpush3.bf16.msra.mxu1 %v3947_v26 }
 0x15e   : > { %3949 = vmatprep.subr.bf16.mxu1 %v4370_v32 }
 0x161   : > { %3772 = vmatmul.mubr.msk.bf16.gmra.mrb[16].mxu1 %vm715_vm3, %v5176_v29  ;;  %v3054_v29 = vld [vmem:[%s5587_s3 + $0x40] sm:$0xff] }
 0x162   : > { %3951 = vmatpush3.bf16.msra.mxu1 %v3950_v25  ;;  %v3959_v28 = vpack.c.bf16 %v3055_v22, %v3054_v29  ;;  %3943 = vmatprep.mubr.msk.f32.mxu1 %vm4371_vm8, %v4372_v23 }
 0x163   : > { %3908 = vmatmul.mubr.msk.bf16.gmra.mrb[40].mxu0 %vm715_vm3, %v3414_v1  ;;  %3952 = vmatprep.subr.bf16.mxu1 %v4370_v32 }
 0x166   : > { %3954 = vmatpush3.bf16.msra.mxu1 %v3953_v50 }
 0x167   : > { %3955 = vmatprep.subr.bf16.mxu1 %v4370_v32 }
 0x16a   : > { %3957 = vmatpush3.bf16.msra.mxu1 %v3956_v34 }
 0x16b   : > { %3958 = vmatprep.subr.bf16.mxu1 %v4370_v32 }
 0x16e   : > { %3960 = vmatpush3.bf16.msra.mxu1 %v3959_v28 }
 0x16f   : > { %3961 = vmatprep.subr.bf16.mxu1 %v4370_v32 }
 0x172   : > { %3963 = vmatpush3.bf16.msra.mxu1 %v3962_v60 }
 0x173   : > { %3964 = vmatprep.subr.bf16.mxu1 %v4370_v32 }
 0x1c4   : > { %v3711_v24 = vpop.f32.mrb[20].mxu1 }
 0x1c5   : > { %v3974_v5 = vadd.f32 %v3711_v24, %v5304_v4  ;;  %v1693_v62 = vpop.f32.mrb[21].mxu1  ;;  %v3058_v4 = vld [vmem:[%s5587_s3 + $0x60] sm:$0xff] }
 0x1c6   : > { %v3976_v17 = vadd.f32 %v1693_v62, %v5306_v14  ;;  %v3712_v63 = vpop.f32.mrb[22].mxu1  ;;  %v3059_v14 = vld [vmem:[%s5587_s3 + $0x68] sm:$0xff] }
 0x1c7   : > { %v3978_v6 = vadd.f32 %v3712_v63, %v5308_v10  ;;  %v1696_v27 = vpop.f32.mrb[23].mxu1  ;;  %v3965_v42 = vpack.c.bf16 %v3059_v14, %v3058_v4  ;;  %v3061_v10 = vld [vmem:[%s5587_s3 + $0x78] sm:$0xff] }
 0x1c8   : > { %v3980_v39 = vadd.f32 %v1696_v27, %v5310_v16  ;;  %v3968_v16 = vpack.c.bf16 %v3061_v10, %v3060_v59 }
 0x1c9   : > { %3966 = vmatpush3.bf16.msra.mxu1 %v3965_v42 }
 0x1ca   : > { %3967 = vmatprep.subr.bf16.mxu1 %v4370_v32 }
 0x1cd   : > { %3969 = vmatpush3.bf16.msra.mxu1 %v3968_v16 }
 0x1fe   : > { %v3881_v13 = vpop.f32.mrb[12].mxu0 }
 0x1ff   : > { %v3975_v9 = vadd.f32 %v3974_v5, %v3881_v13  ;;  %v2779_v53 = vpop.f32.mrb[13].mxu0 }
 0x200   : > { %v3977_v49 = vadd.f32 %v3976_v17, %v2779_v53  ;;  %v3882_v40 = vpop.f32.mrb[14].mxu0 }
 0x201   : > { %v3979_v19 = vadd.f32 %v3978_v6, %v3882_v40  ;;  %v2782_v18 = vpop.f32.mrb[15].mxu0  ;;  %v2947_v48 = vadd.f32 %v3975_v9, %v5492_v11 }
 0x202   : > { %v2945_v51 = vadd.f32 %v3977_v49, %v5492_v11  ;;  %v3981_v3 = vadd.f32 %v3980_v39, %v2782_v18 }
 0x203   : > { %v2948_v47 = vadd.f32 %v3979_v19, %v5492_v11  ;;  %v2979_v15 = vmax.f32 %v2947_v48, 0.0 }
 0x204   : > { %v2946_v46 = vadd.f32 %v3981_v3, %v5492_v11  ;;  %v3749_v37 = vpop.f32.mrb[24].mxu1  ;;  %v2977_v8 = vmax.f32 %v2945_v51, 0.0 }
 0x205   : > { %v3982_v41 = vadd.f32 %v3749_v37, %v5336_v56  ;;  %v1937_v61 = vpop.f32.mrb[25].mxu1  ;;  %v2980_v50 = vmax.f32 %v2948_v47, 0.0 }
 0x206   : > { %v2978_v12 = vmax.f32 %v2946_v46, 0.0  ;;  %v3885_v31 = vpop.f32.mrb[16].mxu0  ;;  %v3984_v20 = vadd.f32 %v1937_v61, %v5338_v38  ;;  %v3750_v45 = vpop.f32.mrb[26].mxu1 }
 0x207   : > { %v2795_v1 = vpop.f32.mrb[17].mxu0  ;;  %v3986_v32 = vadd.f32 %v3750_v45, %v5340_v30  ;;  %v1940_v26 = vpop.f32.mrb[27].mxu1  ;;  %v3983_v21 = vadd.f32 %v3982_v41, %v3885_v31 }
 0x208   : > { %v3009_v54 = vadd.f32 %v2978_v12, %v2977_v8  ;;  %v3886_v57 = vpop.f32.mrb[18].mxu0  ;;  %v3988_v25 = vadd.f32 %v1940_v26, %v5342_v44  ;;  %v3985_v36 = vadd.f32 %v3984_v20, %v2795_v1 }
 0x209   : > { %v2798_v58 = vpop.f32.mrb[19].mxu0  ;;  %v3987_v56 = vadd.f32 %v3986_v32, %v3886_v57  ;;  %v2951_v29 = vadd.f32 %v3983_v21, %v5492_v11 }
 0x20a   : > { %v3010_v2 = vadd.f32 %v3009_v54, %v2979_v15  ;;  %v2949_v0 = vadd.f32 %v3985_v36, %v5492_v11  ;;  %v3989_v34 = vadd.f32 %v3988_v25, %v2798_v58 }
 0x20b   : > { %v2952_v17 = vadd.f32 %v3987_v56, %v5492_v11  ;;  %v2983_v14 = vmax.f32 %v2951_v29, 0.0 }
 0x20c   : > { %v3011_v38 = vadd.f32 %v3010_v2, %v2980_v50  ;;  %v2981_v22 = vmax.f32 %v2949_v0, 0.0  ;;  %v2950_v28 = vadd.f32 %v3989_v34, %v5492_v11  ;;  %v3753_v30 = vpop.f32.mrb[28].mxu1 }
 0x20d   : > { %v3990_v24 = vadd.f32 %v3753_v30, %v5363_v7  ;;  %v1953_v5 = vpop.f32.mrb[29].mxu1  ;;  %v2984_v23 = vmax.f32 %v2952_v17, 0.0 }
 0x20e   : > { %v3889_v62 = vpop.f32.mrb[20].mxu0  ;;  %v3012_v44 = vadd.f32 %v3011_v38, %v2981_v22  ;;  %v2982_v63 = vmax.f32 %v2950_v28, 0.0  ;;  %v3992_v43 = vadd.f32 %v1953_v5, %v5365_v55  ;;  %v3754_v52 = vpop.f32.mrb[30].mxu1 }
 0x20f   : > { %v2811_v6 = vpop.f32.mrb[21].mxu0  ;;  %v3994_v27 = vadd.f32 %v3754_v52, %v5367_v35  ;;  %v1956_v60 = vpop.f32.mrb[31].mxu1  ;;  %v3991_v39 = vadd.f32 %v3990_v24, %v3889_v62 }
 0x210   : > { %v3890_v4 = vpop.f32.mrb[22].mxu0  ;;  %v3013_v42 = vadd.f32 %v3012_v44, %v2982_v63  ;;  %v3996_v59 = vadd.f32 %v1956_v60, %v5369_v33  ;;  %v3993_v7 = vadd.f32 %v3992_v43, %v2811_v6 }
 0x211   : > { %v2814_v10 = vpop.f32.mrb[23].mxu0  ;;  %v3995_v16 = vadd.f32 %v3994_v27, %v3890_v4  ;;  %v2955_v55 = vadd.f32 %v3991_v39, %v5492_v11 }
 0x212   : > { %v3014_v13 = vadd.f32 %v3013_v42, %v2983_v14  ;;  %v2953_v9 = vadd.f32 %v3993_v7, %v5492_v11  ;;  %v3997_v53 = vadd.f32 %v3996_v59, %v2814_v10 }
 0x213   : > { %v2956_v33 = vadd.f32 %v3995_v16, %v5492_v11  ;;  %v2987_v61 = vmax.f32 %v2955_v55, 0.0 }
 0x214   : > { %v2985_v49 = vmax.f32 %v2953_v9, 0.0  ;;  %v3015_v40 = vadd.f32 %v3014_v13, %v2984_v23  ;;  %v2954_v35 = vadd.f32 %v3997_v53, %v5492_v11  ;;  %v3757_v19 = vpop.f32.mrb[0].mxu1 }
 0x215   : > { %v1969_v18 = vpop.f32.mrb[1].mxu1  ;;  %v2988_v54 = vmax.f32 %v2956_v33, 0.0 }
 0x216   : > { %v3893_v51 = vpop.f32.mrb[24].mxu0  ;;  %v3016_v3 = vadd.f32 %v3015_v40, %v2985_v49  ;;  %v2986_v48 = vmax.f32 %v2954_v35, 0.0  ;;  %v3758_v46 = vpop.f32.mrb[2].mxu1 }
 0x217   : > { %v3998_v37 = vadd.f32 %v3893_v51, %v3757_v19  ;;  %v2827_v8 = vpop.f32.mrb[25].mxu0  ;;  %v1972_v47 = vpop.f32.mrb[3].mxu1 }
 0x218   : > { %v3999_v12 = vadd.f32 %v2827_v8, %v1969_v18  ;;  %v3894_v41 = vpop.f32.mrb[26].mxu0  ;;  %v3017_v31 = vadd.f32 %v3016_v3, %v2986_v48 }
 0x219   : > { %v4000_v20 = vadd.f32 %v3894_v41, %v3758_v46  ;;  %v2830_v45 = vpop.f32.mrb[27].mxu0  ;;  %v2959_v57 = vadd.f32 %v3998_v37, %v5492_v11 }
 0x21a   : > { %v2957_v1 = vadd.f32 %v3999_v12, %v5492_v11  ;;  %v4001_v15 = vadd.f32 %v2830_v45, %v1972_v47  ;;  %v3018_v32 = vadd.f32 %v3017_v31, %v2987_v61 }
 0x21b   : > { %v2960_v0 = vadd.f32 %v4000_v20, %v5492_v11  ;;  %v2991_v24 = vmax.f32 %v2959_v57, 0.0 }
 0x21c   : > { %v2989_v26 = vmax.f32 %v2957_v1, 0.0  ;;  %v2958_v21 = vadd.f32 %v4001_v15, %v5492_v11  ;;  %v3019_v25 = vadd.f32 %v3018_v32, %v2988_v54  ;;  %v3761_v36 = vpop.f32.mrb[4].mxu1 }
 0x21d   : > { %v1985_v50 = vpop.f32.mrb[5].mxu1  ;;  %v2992_v43 = vmax.f32 %v2960_v0, 0.0 }
 0x21e   : > { %v2990_v58 = vmax.f32 %v2958_v21, 0.0  ;;  %v3897_v2 = vpop.f32.mrb[28].mxu0  ;;  %v3020_v56 = vadd.f32 %v3019_v25, %v2989_v26  ;;  %v3762_v34 = vpop.f32.mrb[6].mxu1 }
 0x21f   : > { %v4002_v38 = vadd.f32 %v3897_v2, %v3761_v36  ;;  %v2843_v29 = vpop.f32.mrb[29].mxu0  ;;  %v1988_v22 = vpop.f32.mrb[7].mxu1 }
 0x220   : > { %v4003_v28 = vadd.f32 %v2843_v29, %v1985_v50  ;;  %v3898_v30 = vpop.f32.mrb[30].mxu0  ;;  %v3021_v5 = vadd.f32 %v3020_v56, %v2990_v58 }
 0x221   : > { %v4004_v62 = vadd.f32 %v3898_v30, %v3762_v34  ;;  %v2846_v44 = vpop.f32.mrb[31].mxu0  ;;  %v2963_v60 = vadd.f32 %v4002_v38, %v5492_v11 }
 0x222   : > { %v2961_v17 = vadd.f32 %v4003_v28, %v5492_v11  ;;  %v4005_v63 = vadd.f32 %v2846_v44, %v1988_v22  ;;  %v3022_v52 = vadd.f32 %v3021_v5, %v2991_v24 }
 0x223   : > { %v2964_v10 = vadd.f32 %v4004_v62, %v5492_v11  ;;  %v2995_v49 = vmax.f32 %v2963_v60, 0.0 }
 0x224   : > { %v2993_v6 = vmax.f32 %v2961_v17, 0.0  ;;  %v2962_v27 = vadd.f32 %v4005_v63, %v5492_v11  ;;  %v3023_v39 = vadd.f32 %v3022_v52, %v2992_v43  ;;  %v3765_v4 = vpop.f32.mrb[8].mxu1 }
 0x225   : > { %v2001_v42 = vpop.f32.mrb[9].mxu1  ;;  %v2996_v3 = vmax.f32 %v2964_v10, 0.0 }
 0x226   : > { %v2994_v14 = vmax.f32 %v2962_v27, 0.0  ;;  %v3901_v59 = vpop.f32.mrb[32].mxu0  ;;  %v3024_v7 = vadd.f32 %v3023_v39, %v2993_v6  ;;  %v3766_v16 = vpop.f32.mrb[10].mxu1 }
 0x227   : > { %v4006_v23 = vadd.f32 %v3901_v59, %v3765_v4  ;;  %v2859_v13 = vpop.f32.mrb[33].mxu0  ;;  %v2004_v9 = vpop.f32.mrb[11].mxu1 }
 0x228   : > { %v4007_v53 = vadd.f32 %v2859_v13, %v2001_v42  ;;  %v3902_v55 = vpop.f32.mrb[34].mxu0  ;;  %v3025_v40 = vadd.f32 %v3024_v7, %v2994_v14 }
 0x229   : > { %v4008_v35 = vadd.f32 %v3902_v55, %v3766_v16  ;;  %v2862_v19 = vpop.f32.mrb[35].mxu0  ;;  %v2967_v37 = vadd.f32 %v4006_v23, %v5492_v11 }
 0x22a   : > { %v2965_v18 = vadd.f32 %v4007_v53, %v5492_v11  ;;  %v4009_v51 = vadd.f32 %v2862_v19, %v2004_v9  ;;  %v3026_v33 = vadd.f32 %v3025_v40, %v2995_v49 }
 0x22b   : > { %v2968_v20 = vadd.f32 %v4008_v35, %v5492_v11  ;;  %v2999_v21 = vmax.f32 %v2967_v37, 0.0 }
 0x22c   : > { %v2997_v48 = vmax.f32 %v2965_v18, 0.0  ;;  %v2966_v46 = vadd.f32 %v4009_v51, %v5492_v11  ;;  %v3027_v8 = vadd.f32 %v3026_v33, %v2996_v3  ;;  %v3769_v47 = vpop.f32.mrb[12].mxu1 }
 0x22d   : > { %v2017_v41 = vpop.f32.mrb[13].mxu1  ;;  %v3000_v2 = vmax.f32 %v2968_v20, 0.0 }
 0x22e   : > { %v2998_v12 = vmax.f32 %v2966_v46, 0.0  ;;  %v3905_v61 = vpop.f32.mrb[36].mxu0  ;;  %v3028_v31 = vadd.f32 %v3027_v8, %v2997_v48  ;;  %v3770_v45 = vpop.f32.mrb[14].mxu1  ;;  %v3062_v8 = vld [vmem:[%s5588_s4] sm:$0x1] }
 0x22f   : > { %v4010_v1 = vadd.f32 %v3905_v61, %v3769_v47  ;;  %v2875_v15 = vpop.f32.mrb[37].mxu0  ;;  %v2020_v54 = vpop.f32.mrb[15].mxu1 }
 0x230   : > { %v4011_v32 = vadd.f32 %v2875_v15, %v2017_v41  ;;  %v3906_v26 = vpop.f32.mrb[38].mxu0  ;;  %v3029_v57 = vadd.f32 %v3028_v31, %v2998_v12 }
 0x231   : > { %v4012_v25 = vadd.f32 %v3906_v26, %v3770_v45  ;;  %v2878_v36 = vpop.f32.mrb[39].mxu0  ;;  %v2971_v38 = vadd.f32 %v4010_v1, %v5492_v11 }
 0x232   : > { %v2969_v58 = vadd.f32 %v4011_v32, %v5492_v11  ;;  %v4013_v50 = vadd.f32 %v2878_v36, %v2020_v54  ;;  %v3030_v56 = vadd.f32 %v3029_v57, %v2999_v21 }
 0x233   : > { %v2972_v62 = vadd.f32 %v4012_v25, %v5492_v11  ;;  %v3003_v27 = vmax.f32 %v2971_v38, 0.0 }
 0x234   : > { %v3001_v0 = vmax.f32 %v2969_v58, 0.0  ;;  %v2970_v34 = vadd.f32 %v4013_v50, %v5492_v11  ;;  %v3031_v29 = vadd.f32 %v3030_v56, %v3000_v2  ;;  %v3773_v22 = vpop.f32.mrb[16].mxu1 }
 0x235   : > { %v2033_v30 = vpop.f32.mrb[17].mxu1  ;;  %v3004_v59 = vmax.f32 %v2972_v62, 0.0 }
 0x236   : > { %v3002_v28 = vmax.f32 %v2970_v34, 0.0  ;;  %v3909_v24 = vpop.f32.mrb[40].mxu0  ;;  %v3032_v5 = vadd.f32 %v3031_v29, %v3001_v0  ;;  %v3774_v44 = vpop.f32.mrb[18].mxu1 }
 0x237   : > { %v4014_v17 = vadd.f32 %v3909_v24, %v3773_v22  ;;  %v2891_v63 = vpop.f32.mrb[41].mxu0  ;;  %v2036_v43 = vpop.f32.mrb[19].mxu1 }
 0x238   : > { %v4015_v52 = vadd.f32 %v2891_v63, %v2033_v30  ;;  %v3910_v6 = vpop.f32.mrb[42].mxu0  ;;  %v3033_v60 = vadd.f32 %v3032_v5, %v3002_v28 }
 0x239   : > { %v4016_v39 = vadd.f32 %v3910_v6, %v3774_v44  ;;  %v2894_v4 = vpop.f32.mrb[43].mxu0  ;;  %v2975_v23 = vadd.f32 %v4014_v17, %v5492_v11 }
 0x23a   : > { %v2973_v14 = vadd.f32 %v4015_v52, %v5492_v11  ;;  %v4017_v42 = vadd.f32 %v2894_v4, %v2036_v43  ;;  %v3034_v7 = vadd.f32 %v3033_v60, %v3003_v27 }
 0x23b   : > { %v2976_v55 = vadd.f32 %v4016_v39, %v5492_v11  ;;  %v3007_v49 = vmax.f32 %v2975_v23, 0.0 }
 0x23c   : > { %v3005_v10 = vmax.f32 %v2973_v14, 0.0  ;;  %v2974_v16 = vadd.f32 %v4017_v42, %v5492_v11  ;;  %v3035_v13 = vadd.f32 %v3034_v7, %v3004_v59 }
 0x23d   : > { %v3008_v35 = vmax.f32 %v2976_v55, 0.0 }
 0x23e   : > { %v3006_v9 = vmax.f32 %v2974_v16, 0.0  ;;  %v3036_v53 = vadd.f32 %v3035_v13, %v3005_v10 }
 0x240   : > { %v3037_v40 = vadd.f32 %v3036_v53, %v3006_v9 }
 0x242   : > { %v3038_v19 = vadd.f32 %v3037_v40, %v3007_v49 }
 0x244   : > { %v3039_v18 = vadd.f32 %v3038_v19, %v3008_v35 }
 0x246   : > { %v3040_v51 = vrot.slane %v3039_v18, 4 }
 0x248   : > { %v3041_v3 = vadd.f32 %v3040_v51, %v3039_v18 }
 0x24a   : > { %v3042_v33 = vrot.slane %v3041_v3, 2 }
 0x24c   : > { %v3043_v48 = vadd.f32 %v3042_v33, %v3041_v3 }
 0x24e   : > { %v3044_v46 = vrot.slane %v3043_v48, 1 }
 0x250   : > { %v3045_v37 = vadd.f32 %v3044_v46, %v3043_v48 }
 0x252   : > { %3944 = vmatmul.mubr.f32.vlgmr.msra.gmra.mrb[32].mxu1 %v3045_v37 }
 0x325   : > { %v3129_v11 = vpop.f32.mrb[32].mxu1 }
 0x326   : > { %v3130_v47 = vadd.f32 %v3129_v11, %v3062_v8  ;;  %v3945_v12 = vpop.f32.mrb[33].mxu1 }
 0x328   : > { %3133 = vst [vmem:[%s216_s26] sm:$0x1] %v3130_v47 }
 0x329   : > { %4319 = shalt.err (!%p4316_p3)
}
 0x32a   : > { %s4320_s13 = scalar_lea.hbm %s5542_s8, 16  ;;  %s4324_s16 = scalar_lea.hbm %s5589_s5, 32 }
 0x32b   : > { %p4321_p4 = scmp.ne.s32.totalorder %s5542_s8, %s4320_s13  ;;  %p4325_p9 = scmp.lt.u32.totalorder %s5542_s8, %s5589_s5 }
 0x32c   : > { %p4326_p10 = scmp.lt.u32.totalorder %s4324_s16, %s4320_s13  ;;  %p4328_p12 = scmp.lt.u32.totalorder %s4320_s13, %s5542_s8 }
 0x32d   : > { %p4322_p7 = pnand %p4321_p4, %p4442_p5 }
 0x32e   : > { %p4327_p11 = por %p4326_p10, %p4325_p9 }
 0x32f   : > { %p4323_p8 = pneg %p4322_p7 }
 0x330   : > { %p4329_p13 = por %p4328_p12, %p4327_p11 }
 0x332   : > { %p4330_p0 = pnand %p4329_p13, %p4323_p8 }
 0x334   : > { %4333 = shalt.err (!%p4330_p0)
}
 0x335   : > { %4242 = dma.vmem_to_hbm [thread:$0]  (%p4442_p5), %s5544_s30, 16, %s5542_s8, %s3135_s9  }
 0x336 PF: > { %p4248_p1 = scmp.ge.s32.totalorder %s4368_s21, 2  ;;  %s3159_s25 = sand.u32 1, %s4356_s18  }
 0x337   : > { %s3160_s26 = scalar_lea.sflag [#allocation3], %s3159_s25 }
 0x338   : > { %p4245_p2 = pnand %p4248_p1, %p4446_p6 }
 0x33a   : > { %4351 = dma.done.wait (!%p4245_p2), %s3160_s26, 16  }
 0x33b   : > { %4353 = vsyncadd (!%p4245_p2), %s3160_s26, 4294967280  ;;  %p15_p3 = scmp.ge.s32.totalorder %s4429_s24, 4   ;;  %s5678_s18 = smov %s4360_s19 }
 0x33c   : > { %s5679_s19 = smov %s4364_s20  ;;  %s5680_s20 = smov %s4440_s27 }
 0x33d   : > { %s5681_s21 = smov %s4429_s24  ;;  %17 = sbr.rel (!%p15_p3) target bundleno = 3 (0x3), region = 83 }
 0x344   :  { %3164 = vsyncpa [#allocation3], 1 }
 0x345   :  { %3166 = vsyncpa [#allocation3 + $0x1], 1 }

</bundles_post_ra>
